<compile_context>
chip_gen: v7x
topology: tpu7x:2x2x1
jax: 0.10.0
libtpu: 0.0.40
codegen_flags: <defaults>
</compile_context>

<pallas_src>
import functools

import jax
import jax.numpy as jnp
from jax import lax
from jax.experimental import pallas as pl
from jax.experimental.pallas import tpu as pltpu

_INT32_SIGN = -(1 << 31)  # 0x80000000 as int32


def _contact_kernel(x_ref, tgt_ref, o_ref, *, dimension, duration, rank):
    """x_ref:  (B, T, D) f32 trajectory tile in VMEM.
    tgt_ref: (1,) f32 target force in SMEM.
    o_ref:   (1, 1) f32 output |lower_median - target|."""
    x = x_ref[...]                                   # (B, T, D) f32
    B, T, D = x.shape

    # Select trajectory[:, -duration:, dimension] purely with masks — no
    # gather / relayout inside the kernel.
    t_idx = lax.broadcasted_iota(jnp.int32, (B, T, D), 1)
    d_idx = lax.broadcasted_iota(jnp.int32, (B, T, D), 2)
    valid = (t_idx >= T - duration) & (d_idx == dimension)

    # Order-preserving map f32 -> 32-bit key (compare as unsigned bit pattern):
    #   negative floats -> ~bits ; non-negative floats -> bits ^ 0x80000000.
    bits = pltpu.bitcast(x, jnp.int32)
    keys = jnp.where(bits < 0, ~bits, bits ^ jnp.int32(_INT32_SIGN))
    # Invalid slots: all-ones key. Every bit is 1, so they can never enter a
    # "current bit == 0" count below -> completely inert in the select.
    keys = jnp.where(valid, keys, jnp.int32(-1))

    # 32-step radix select for the `rank`-th smallest key (lower median).
    # Fixed trip count with constant masks -> static unroll is cheapest.
    ans = jnp.int32(0)            # determined high bits of the answer key
    remaining = jnp.int32(rank)   # rank still to satisfy within current prefix
    for b in range(31, -1, -1):
        bit = jnp.int32(_INT32_SIGN) if b == 31 else jnp.int32(1 << b)
        mask = jnp.int32(-(1 << b))                  # bits 31..b
        # Count elements matching the prefix with current bit == 0.
        c0 = jnp.sum(jnp.where((keys & mask) == ans, jnp.int32(1), jnp.int32(0)))
        take_one = remaining >= c0                   # answer's bit b is 1
        ans = jnp.where(take_one, ans | bit, ans)
        remaining = jnp.where(take_one, remaining - c0, remaining)

    # All elements whose key equals `ans` share one float value; a masked max
    # recovers it without an inverse bitcast (exact integer-key equality only).
    median = jnp.max(jnp.where(valid & (keys == ans), x, -jnp.inf))

    o_ref[...] = jnp.full((1, 1), jnp.abs(median - tgt_ref[0]), dtype=jnp.float32)


def contact_objective(trajectory, target_force, *, dimension=11, weight=1.0,
                      duration=3):
    """JAX/Pallas equivalent of ContactObjective.forward.

    trajectory: (B, T, D) float array, D > dimension.
    target_force: scalar (0-d or shape-(1,)) float array.
    Returns a scalar f32 loss. (`weight` is stored but unused in the torch
    forward, so it is unused here as well.)
    """
    traj = jnp.asarray(trajectory, dtype=jnp.float32)
    B, T, D = traj.shape
    eff_dur = min(duration, T)                 # mimic python [-duration:] clamping
    n = B * eff_dur
    k = (n - 1) // 2                           # lower-median rank (torch.median)
    tgt = jnp.reshape(jnp.asarray(target_force, dtype=jnp.float32), (1,))

    out = pl.pallas_call(
        functools.partial(_contact_kernel, dimension=dimension,
                          duration=eff_dur, rank=k),
        out_shape=jax.ShapeDtypeStruct((1, 1), jnp.float32),
        in_specs=[
            pl.BlockSpec(memory_space=pltpu.MemorySpace.VMEM),
            pl.BlockSpec(memory_space=pltpu.MemorySpace.SMEM),
        ],
        out_specs=pl.BlockSpec(memory_space=pltpu.MemorySpace.VMEM),
    )(traj, tgt)
    return out[0, 0]


def _reference(trajectory, target_force, dimension=11, duration=3):
    sl = trajectory[:, -duration:, dimension].reshape(-1)
    lower_median = jnp.sort(sl)[(sl.shape[0] - 1) // 2]
    return jnp.abs(lower_median - target_force)


if __name__ == "__main__":
    key = jax.random.PRNGKey(0)
    k_traj, k_tgt, k_traj2 = jax.random.split(key, 3)

    # Shapes consistent with the forward: (batch=2, seq=8, features=16),
    # dimension index 11 < 16, duration 3 <= 8.
    trajectory = jax.random.normal(k_traj, (2, 8, 16), dtype=jnp.float32)
    target_force = jax.random.normal(k_tgt, (), dtype=jnp.float32)

    loss = contact_objective(trajectory, target_force)
    jax.block_until_ready(loss)
    ref = _reference(trajectory, target_force)
    assert jnp.allclose(loss, ref, atol=1e-6), (loss, ref)

    # Second check: even element count (n = 12) with deliberate ties and
    # negatives to exercise the radix select + sign-flip key mapping.
    trajectory2 = jax.random.normal(k_traj2, (4, 8, 16), dtype=jnp.float32)
    trajectory2 = trajectory2.at[:, :, 11].set(
        jnp.round(trajectory2[:, :, 11] * 2.0) * 0.5)
    loss2 = contact_objective(trajectory2, target_force)
    jax.block_until_ready(loss2)
    ref2 = _reference(trajectory2, target_force)
    assert jnp.allclose(loss2, ref2, atol=1e-6), (loss2, ref2)

    print("KERNEL_OK")
</pallas_src>

<mosaic_0001>
module attributes {stable_mosaic.version = 11 : i64} {
  func.func @_contact_kernel(%arg0: memref<2x8x16xf32, #tpu.memory_space<vmem>>, %arg1: memref<1xf32, #tpu.memory_space<smem>>, %arg2: memref<1x1xf32, #tpu.memory_space<vmem>>) attributes {dimension_semantics = [], scalar_prefetch = 0 : i64, scratch_operands = 0 : i64, tpu.core_type = #tpu.core_type<tc>} {
    %c0 = arith.constant 0 : index
    %c0_0 = arith.constant 0 : index
    %c0_1 = arith.constant 0 : index
    %0 = vector.load %arg0[%c0, %c0_0, %c0_1] : memref<2x8x16xf32, #tpu.memory_space<vmem>>, vector<2x8x16xf32>
    %1 = tpu.iota {dimensions = array<i32: 1>} : vector<2x8x16xi32>
    %2 = tpu.iota {dimensions = array<i32: 2>} : vector<2x8x16xi32>
    %c5_i32 = arith.constant 5 : i32
    %3 = vector.broadcast %c5_i32 : i32 to vector<2x8x16xi32>
    %4 = arith.cmpi sge, %1, %3 : vector<2x8x16xi32>
    %c11_i32 = arith.constant 11 : i32
    %5 = vector.broadcast %c11_i32 : i32 to vector<2x8x16xi32>
    %6 = arith.cmpi eq, %2, %5 : vector<2x8x16xi32>
    %7 = arith.andi %4, %6 : vector<2x8x16xi1>
    %8 = tpu.bitcast %0 : vector<2x8x16xf32> -> vector<2x8x16xi32>
    %c0_i32 = arith.constant 0 : i32
    %9 = vector.broadcast %c0_i32 : i32 to vector<2x8x16xi32>
    %10 = arith.cmpi slt, %8, %9 : vector<2x8x16xi32>
    %cst = arith.constant dense<-1> : vector<2x8x16xi32>
    %11 = arith.xori %8, %cst : vector<2x8x16xi32>
    %c-2147483648_i32 = arith.constant -2147483648 : i32
    %12 = vector.broadcast %c-2147483648_i32 : i32 to vector<2x8x16xi32>
    %13 = arith.xori %8, %12 : vector<2x8x16xi32>
    %14 = arith.select %10, %11, %13 : vector<2x8x16xi1>, vector<2x8x16xi32>
    %c-1_i32 = arith.constant -1 : i32
    %15 = vector.broadcast %c-1_i32 : i32 to vector<2x8x16xi32>
    %16 = arith.select %7, %14, %15 : vector<2x8x16xi1>, vector<2x8x16xi32>
    %c-2147483648_i32_2 = arith.constant -2147483648 : i32
    %17 = vector.broadcast %c-2147483648_i32_2 : i32 to vector<2x8x16xi32>
    %18 = arith.andi %16, %17 : vector<2x8x16xi32>
    %c0_i32_3 = arith.constant 0 : i32
    %19 = vector.broadcast %c0_i32_3 : i32 to vector<2x8x16xi32>
    %20 = arith.cmpi eq, %18, %19 : vector<2x8x16xi32>
    %c1_i32 = arith.constant 1 : i32
    %c0_i32_4 = arith.constant 0 : i32
    %21 = vector.broadcast %c1_i32 : i32 to vector<2x8x16xi32>
    %22 = vector.broadcast %c0_i32_4 : i32 to vector<2x8x16xi32>
    %23 = arith.select %20, %21, %22 : vector<2x8x16xi1>, vector<2x8x16xi32>
    %24 = vector.shape_cast %23 : vector<2x8x16xi32> to vector<1x2x8x16xi32>
    %cst_5 = arith.constant dense<0> : vector<1xi32>
    %25 = vector.multi_reduction <add>, %24, %cst_5 [1, 2, 3] : vector<1x2x8x16xi32> to vector<1xi32>
    %26 = vector.shape_cast %25 : vector<1xi32> to vector<1x1x1x1xi32>
    %27 = vector.extract %26[0, 0, 0, 0] : i32 from vector<1x1x1x1xi32>
    %c2_i32 = arith.constant 2 : i32
    %28 = arith.cmpi sge, %c2_i32, %27 : i32
    %c0_i32_6 = arith.constant 0 : i32
    %c-2147483648_i32_7 = arith.constant -2147483648 : i32
    %29 = arith.ori %c0_i32_6, %c-2147483648_i32_7 : i32
    %c0_i32_8 = arith.constant 0 : i32
    %30 = arith.select %28, %29, %c0_i32_8 : i32
    %c2_i32_9 = arith.constant 2 : i32
    %31 = arith.subi %c2_i32_9, %27 : i32
    %c2_i32_10 = arith.constant 2 : i32
    %32 = arith.select %28, %31, %c2_i32_10 : i32
    %c-1073741824_i32 = arith.constant -1073741824 : i32
    %33 = vector.broadcast %c-1073741824_i32 : i32 to vector<2x8x16xi32>
    %34 = arith.andi %16, %33 : vector<2x8x16xi32>
    %35 = vector.broadcast %30 : i32 to vector<2x8x16xi32>
    %36 = arith.cmpi eq, %34, %35 : vector<2x8x16xi32>
    %c1_i32_11 = arith.constant 1 : i32
    %c0_i32_12 = arith.constant 0 : i32
    %37 = vector.broadcast %c1_i32_11 : i32 to vector<2x8x16xi32>
    %38 = vector.broadcast %c0_i32_12 : i32 to vector<2x8x16xi32>
    %39 = arith.select %36, %37, %38 : vector<2x8x16xi1>, vector<2x8x16xi32>
    %40 = vector.shape_cast %39 : vector<2x8x16xi32> to vector<1x2x8x16xi32>
    %cst_13 = arith.constant dense<0> : vector<1xi32>
    %41 = vector.multi_reduction <add>, %40, %cst_13 [1, 2, 3] : vector<1x2x8x16xi32> to vector<1xi32>
    %42 = vector.shape_cast %41 : vector<1xi32> to vector<1x1x1x1xi32>
    %43 = vector.extract %42[0, 0, 0, 0] : i32 from vector<1x1x1x1xi32>
    %44 = arith.cmpi sge, %32, %43 : i32
    %c1073741824_i32 = arith.constant 1073741824 : i32
    %45 = arith.ori %30, %c1073741824_i32 : i32
    %46 = arith.select %44, %45, %30 : i32
    %47 = arith.subi %32, %43 : i32
    %48 = arith.select %44, %47, %32 : i32
    %c-536870912_i32 = arith.constant -536870912 : i32
    %49 = vector.broadcast %c-536870912_i32 : i32 to vector<2x8x16xi32>
    %50 = arith.andi %16, %49 : vector<2x8x16xi32>
    %51 = vector.broadcast %46 : i32 to vector<2x8x16xi32>
    %52 = arith.cmpi eq, %50, %51 : vector<2x8x16xi32>
    %c1_i32_14 = arith.constant 1 : i32
    %c0_i32_15 = arith.constant 0 : i32
    %53 = vector.broadcast %c1_i32_14 : i32 to vector<2x8x16xi32>
    %54 = vector.broadcast %c0_i32_15 : i32 to vector<2x8x16xi32>
    %55 = arith.select %52, %53, %54 : vector<2x8x16xi1>, vector<2x8x16xi32>
    %56 = vector.shape_cast %55 : vector<2x8x16xi32> to vector<1x2x8x16xi32>
    %cst_16 = arith.constant dense<0> : vector<1xi32>
    %57 = vector.multi_reduction <add>, %56, %cst_16 [1, 2, 3] : vector<1x2x8x16xi32> to vector<1xi32>
    %58 = vector.shape_cast %57 : vector<1xi32> to vector<1x1x1x1xi32>
    %59 = vector.extract %58[0, 0, 0, 0] : i32 from vector<1x1x1x1xi32>
    %60 = arith.cmpi sge, %48, %59 : i32
    %c536870912_i32 = arith.constant 536870912 : i32
    %61 = arith.ori %46, %c536870912_i32 : i32
    %62 = arith.select %60, %61, %46 : i32
    %63 = arith.subi %48, %59 : i32
    %64 = arith.select %60, %63, %48 : i32
    %c-268435456_i32 = arith.constant -268435456 : i32
    %65 = vector.broadcast %c-268435456_i32 : i32 to vector<2x8x16xi32>
    %66 = arith.andi %16, %65 : vector<2x8x16xi32>
    %67 = vector.broadcast %62 : i32 to vector<2x8x16xi32>
    %68 = arith.cmpi eq, %66, %67 : vector<2x8x16xi32>
    %c1_i32_17 = arith.constant 1 : i32
    %c0_i32_18 = arith.constant 0 : i32
    %69 = vector.broadcast %c1_i32_17 : i32 to vector<2x8x16xi32>
    %70 = vector.broadcast %c0_i32_18 : i32 to vector<2x8x16xi32>
    %71 = arith.select %68, %69, %70 : vector<2x8x16xi1>, vector<2x8x16xi32>
    %72 = vector.shape_cast %71 : vector<2x8x16xi32> to vector<1x2x8x16xi32>
    %cst_19 = arith.constant dense<0> : vector<1xi32>
    %73 = vector.multi_reduction <add>, %72, %cst_19 [1, 2, 3] : vector<1x2x8x16xi32> to vector<1xi32>
    %74 = vector.shape_cast %73 : vector<1xi32> to vector<1x1x1x1xi32>
    %75 = vector.extract %74[0, 0, 0, 0] : i32 from vector<1x1x1x1xi32>
    %76 = arith.cmpi sge, %64, %75 : i32
    %c268435456_i32 = arith.constant 268435456 : i32
    %77 = arith.ori %62, %c268435456_i32 : i32
    %78 = arith.select %76, %77, %62 : i32
    %79 = arith.subi %64, %75 : i32
    %80 = arith.select %76, %79, %64 : i32
    %c-134217728_i32 = arith.constant -134217728 : i32
    %81 = vector.broadcast %c-134217728_i32 : i32 to vector<2x8x16xi32>
    %82 = arith.andi %16, %81 : vector<2x8x16xi32>
    %83 = vector.broadcast %78 : i32 to vector<2x8x16xi32>
    %84 = arith.cmpi eq, %82, %83 : vector<2x8x16xi32>
    %c1_i32_20 = arith.constant 1 : i32
    %c0_i32_21 = arith.constant 0 : i32
    %85 = vector.broadcast %c1_i32_20 : i32 to vector<2x8x16xi32>
    %86 = vector.broadcast %c0_i32_21 : i32 to vector<2x8x16xi32>
    %87 = arith.select %84, %85, %86 : vector<2x8x16xi1>, vector<2x8x16xi32>
    %88 = vector.shape_cast %87 : vector<2x8x16xi32> to vector<1x2x8x16xi32>
    %cst_22 = arith.constant dense<0> : vector<1xi32>
    %89 = vector.multi_reduction <add>, %88, %cst_22 [1, 2, 3] : vector<1x2x8x16xi32> to vector<1xi32>
    %90 = vector.shape_cast %89 : vector<1xi32> to vector<1x1x1x1xi32>
    %91 = vector.extract %90[0, 0, 0, 0] : i32 from vector<1x1x1x1xi32>
    %92 = arith.cmpi sge, %80, %91 : i32
    %c134217728_i32 = arith.constant 134217728 : i32
    %93 = arith.ori %78, %c134217728_i32 : i32
    %94 = arith.select %92, %93, %78 : i32
    %95 = arith.subi %80, %91 : i32
    %96 = arith.select %92, %95, %80 : i32
    %c-67108864_i32 = arith.constant -67108864 : i32
    %97 = vector.broadcast %c-67108864_i32 : i32 to vector<2x8x16xi32>
    %98 = arith.andi %16, %97 : vector<2x8x16xi32>
    %99 = vector.broadcast %94 : i32 to vector<2x8x16xi32>
    %100 = arith.cmpi eq, %98, %99 : vector<2x8x16xi32>
    %c1_i32_23 = arith.constant 1 : i32
    %c0_i32_24 = arith.constant 0 : i32
    %101 = vector.broadcast %c1_i32_23 : i32 to vector<2x8x16xi32>
    %102 = vector.broadcast %c0_i32_24 : i32 to vector<2x8x16xi32>
    %103 = arith.select %100, %101, %102 : vector<2x8x16xi1>, vector<2x8x16xi32>
    %104 = vector.shape_cast %103 : vector<2x8x16xi32> to vector<1x2x8x16xi32>
    %cst_25 = arith.constant dense<0> : vector<1xi32>
    %105 = vector.multi_reduction <add>, %104, %cst_25 [1, 2, 3] : vector<1x2x8x16xi32> to vector<1xi32>
    %106 = vector.shape_cast %105 : vector<1xi32> to vector<1x1x1x1xi32>
    %107 = vector.extract %106[0, 0, 0, 0] : i32 from vector<1x1x1x1xi32>
    %108 = arith.cmpi sge, %96, %107 : i32
    %c67108864_i32 = arith.constant 67108864 : i32
    %109 = arith.ori %94, %c67108864_i32 : i32
    %110 = arith.select %108, %109, %94 : i32
    %111 = arith.subi %96, %107 : i32
    %112 = arith.select %108, %111, %96 : i32
    %c-33554432_i32 = arith.constant -33554432 : i32
    %113 = vector.broadcast %c-33554432_i32 : i32 to vector<2x8x16xi32>
    %114 = arith.andi %16, %113 : vector<2x8x16xi32>
    %115 = vector.broadcast %110 : i32 to vector<2x8x16xi32>
    %116 = arith.cmpi eq, %114, %115 : vector<2x8x16xi32>
    %c1_i32_26 = arith.constant 1 : i32
    %c0_i32_27 = arith.constant 0 : i32
    %117 = vector.broadcast %c1_i32_26 : i32 to vector<2x8x16xi32>
    %118 = vector.broadcast %c0_i32_27 : i32 to vector<2x8x16xi32>
    %119 = arith.select %116, %117, %118 : vector<2x8x16xi1>, vector<2x8x16xi32>
    %120 = vector.shape_cast %119 : vector<2x8x16xi32> to vector<1x2x8x16xi32>
    %cst_28 = arith.constant dense<0> : vector<1xi32>
    %121 = vector.multi_reduction <add>, %120, %cst_28 [1, 2, 3] : vector<1x2x8x16xi32> to vector<1xi32>
    %122 = vector.shape_cast %121 : vector<1xi32> to vector<1x1x1x1xi32>
    %123 = vector.extract %122[0, 0, 0, 0] : i32 from vector<1x1x1x1xi32>
    %124 = arith.cmpi sge, %112, %123 : i32
    %c33554432_i32 = arith.constant 33554432 : i32
    %125 = arith.ori %110, %c33554432_i32 : i32
    %126 = arith.select %124, %125, %110 : i32
    %127 = arith.subi %112, %123 : i32
    %128 = arith.select %124, %127, %112 : i32
    %c-16777216_i32 = arith.constant -16777216 : i32
    %129 = vector.broadcast %c-16777216_i32 : i32 to vector<2x8x16xi32>
    %130 = arith.andi %16, %129 : vector<2x8x16xi32>
    %131 = vector.broadcast %126 : i32 to vector<2x8x16xi32>
    %132 = arith.cmpi eq, %130, %131 : vector<2x8x16xi32>
    %c1_i32_29 = arith.constant 1 : i32
    %c0_i32_30 = arith.constant 0 : i32
    %133 = vector.broadcast %c1_i32_29 : i32 to vector<2x8x16xi32>
    %134 = vector.broadcast %c0_i32_30 : i32 to vector<2x8x16xi32>
    %135 = arith.select %132, %133, %134 : vector<2x8x16xi1>, vector<2x8x16xi32>
    %136 = vector.shape_cast %135 : vector<2x8x16xi32> to vector<1x2x8x16xi32>
    %cst_31 = arith.constant dense<0> : vector<1xi32>
    %137 = vector.multi_reduction <add>, %136, %cst_31 [1, 2, 3] : vector<1x2x8x16xi32> to vector<1xi32>
    %138 = vector.shape_cast %137 : vector<1xi32> to vector<1x1x1x1xi32>
    %139 = vector.extract %138[0, 0, 0, 0] : i32 from vector<1x1x1x1xi32>
    %140 = arith.cmpi sge, %128, %139 : i32
    %c16777216_i32 = arith.constant 16777216 : i32
    %141 = arith.ori %126, %c16777216_i32 : i32
    %142 = arith.select %140, %141, %126 : i32
    %143 = arith.subi %128, %139 : i32
    %144 = arith.select %140, %143, %128 : i32
    %c-8388608_i32 = arith.constant -8388608 : i32
    %145 = vector.broadcast %c-8388608_i32 : i32 to vector<2x8x16xi32>
    %146 = arith.andi %16, %145 : vector<2x8x16xi32>
    %147 = vector.broadcast %142 : i32 to vector<2x8x16xi32>
    %148 = arith.cmpi eq, %146, %147 : vector<2x8x16xi32>
    %c1_i32_32 = arith.constant 1 : i32
    %c0_i32_33 = arith.constant 0 : i32
    %149 = vector.broadcast %c1_i32_32 : i32 to vector<2x8x16xi32>
    %150 = vector.broadcast %c0_i32_33 : i32 to vector<2x8x16xi32>
    %151 = arith.select %148, %149, %150 : vector<2x8x16xi1>, vector<2x8x16xi32>
    %152 = vector.shape_cast %151 : vector<2x8x16xi32> to vector<1x2x8x16xi32>
    %cst_34 = arith.constant dense<0> : vector<1xi32>
    %153 = vector.multi_reduction <add>, %152, %cst_34 [1, 2, 3] : vector<1x2x8x16xi32> to vector<1xi32>
    %154 = vector.shape_cast %153 : vector<1xi32> to vector<1x1x1x1xi32>
    %155 = vector.extract %154[0, 0, 0, 0] : i32 from vector<1x1x1x1xi32>
    %156 = arith.cmpi sge, %144, %155 : i32
    %c8388608_i32 = arith.constant 8388608 : i32
    %157 = arith.ori %142, %c8388608_i32 : i32
    %158 = arith.select %156, %157, %142 : i32
    %159 = arith.subi %144, %155 : i32
    %160 = arith.select %156, %159, %144 : i32
    %c-4194304_i32 = arith.constant -4194304 : i32
    %161 = vector.broadcast %c-4194304_i32 : i32 to vector<2x8x16xi32>
    %162 = arith.andi %16, %161 : vector<2x8x16xi32>
    %163 = vector.broadcast %158 : i32 to vector<2x8x16xi32>
    %164 = arith.cmpi eq, %162, %163 : vector<2x8x16xi32>
    %c1_i32_35 = arith.constant 1 : i32
    %c0_i32_36 = arith.constant 0 : i32
    %165 = vector.broadcast %c1_i32_35 : i32 to vector<2x8x16xi32>
    %166 = vector.broadcast %c0_i32_36 : i32 to vector<2x8x16xi32>
    %167 = arith.select %164, %165, %166 : vector<2x8x16xi1>, vector<2x8x16xi32>
    %168 = vector.shape_cast %167 : vector<2x8x16xi32> to vector<1x2x8x16xi32>
    %cst_37 = arith.constant dense<0> : vector<1xi32>
    %169 = vector.multi_reduction <add>, %168, %cst_37 [1, 2, 3] : vector<1x2x8x16xi32> to vector<1xi32>
    %170 = vector.shape_cast %169 : vector<1xi32> to vector<1x1x1x1xi32>
    %171 = vector.extract %170[0, 0, 0, 0] : i32 from vector<1x1x1x1xi32>
    %172 = arith.cmpi sge, %160, %171 : i32
    %c4194304_i32 = arith.constant 4194304 : i32
    %173 = arith.ori %158, %c4194304_i32 : i32
    %174 = arith.select %172, %173, %158 : i32
    %175 = arith.subi %160, %171 : i32
    %176 = arith.select %172, %175, %160 : i32
    %c-2097152_i32 = arith.constant -2097152 : i32
    %177 = vector.broadcast %c-2097152_i32 : i32 to vector<2x8x16xi32>
    %178 = arith.andi %16, %177 : vector<2x8x16xi32>
    %179 = vector.broadcast %174 : i32 to vector<2x8x16xi32>
    %180 = arith.cmpi eq, %178, %179 : vector<2x8x16xi32>
    %c1_i32_38 = arith.constant 1 : i32
    %c0_i32_39 = arith.constant 0 : i32
    %181 = vector.broadcast %c1_i32_38 : i32 to vector<2x8x16xi32>
    %182 = vector.broadcast %c0_i32_39 : i32 to vector<2x8x16xi32>
    %183 = arith.select %180, %181, %182 : vector<2x8x16xi1>, vector<2x8x16xi32>
    %184 = vector.shape_cast %183 : vector<2x8x16xi32> to vector<1x2x8x16xi32>
    %cst_40 = arith.constant dense<0> : vector<1xi32>
    %185 = vector.multi_reduction <add>, %184, %cst_40 [1, 2, 3] : vector<1x2x8x16xi32> to vector<1xi32>
    %186 = vector.shape_cast %185 : vector<1xi32> to vector<1x1x1x1xi32>
    %187 = vector.extract %186[0, 0, 0, 0] : i32 from vector<1x1x1x1xi32>
    %188 = arith.cmpi sge, %176, %187 : i32
    %c2097152_i32 = arith.constant 2097152 : i32
    %189 = arith.ori %174, %c2097152_i32 : i32
    %190 = arith.select %188, %189, %174 : i32
    %191 = arith.subi %176, %187 : i32
    %192 = arith.select %188, %191, %176 : i32
    %c-1048576_i32 = arith.constant -1048576 : i32
    %193 = vector.broadcast %c-1048576_i32 : i32 to vector<2x8x16xi32>
    %194 = arith.andi %16, %193 : vector<2x8x16xi32>
    %195 = vector.broadcast %190 : i32 to vector<2x8x16xi32>
    %196 = arith.cmpi eq, %194, %195 : vector<2x8x16xi32>
    %c1_i32_41 = arith.constant 1 : i32
    %c0_i32_42 = arith.constant 0 : i32
    %197 = vector.broadcast %c1_i32_41 : i32 to vector<2x8x16xi32>
    %198 = vector.broadcast %c0_i32_42 : i32 to vector<2x8x16xi32>
    %199 = arith.select %196, %197, %198 : vector<2x8x16xi1>, vector<2x8x16xi32>
    %200 = vector.shape_cast %199 : vector<2x8x16xi32> to vector<1x2x8x16xi32>
    %cst_43 = arith.constant dense<0> : vector<1xi32>
    %201 = vector.multi_reduction <add>, %200, %cst_43 [1, 2, 3] : vector<1x2x8x16xi32> to vector<1xi32>
    %202 = vector.shape_cast %201 : vector<1xi32> to vector<1x1x1x1xi32>
    %203 = vector.extract %202[0, 0, 0, 0] : i32 from vector<1x1x1x1xi32>
    %204 = arith.cmpi sge, %192, %203 : i32
    %c1048576_i32 = arith.constant 1048576 : i32
    %205 = arith.ori %190, %c1048576_i32 : i32
    %206 = arith.select %204, %205, %190 : i32
    %207 = arith.subi %192, %203 : i32
    %208 = arith.select %204, %207, %192 : i32
    %c-524288_i32 = arith.constant -524288 : i32
    %209 = vector.broadcast %c-524288_i32 : i32 to vector<2x8x16xi32>
    %210 = arith.andi %16, %209 : vector<2x8x16xi32>
    %211 = vector.broadcast %206 : i32 to vector<2x8x16xi32>
    %212 = arith.cmpi eq, %210, %211 : vector<2x8x16xi32>
    %c1_i32_44 = arith.constant 1 : i32
    %c0_i32_45 = arith.constant 0 : i32
    %213 = vector.broadcast %c1_i32_44 : i32 to vector<2x8x16xi32>
    %214 = vector.broadcast %c0_i32_45 : i32 to vector<2x8x16xi32>
    %215 = arith.select %212, %213, %214 : vector<2x8x16xi1>, vector<2x8x16xi32>
    %216 = vector.shape_cast %215 : vector<2x8x16xi32> to vector<1x2x8x16xi32>
    %cst_46 = arith.constant dense<0> : vector<1xi32>
    %217 = vector.multi_reduction <add>, %216, %cst_46 [1, 2, 3] : vector<1x2x8x16xi32> to vector<1xi32>
    %218 = vector.shape_cast %217 : vector<1xi32> to vector<1x1x1x1xi32>
    %219 = vector.extract %218[0, 0, 0, 0] : i32 from vector<1x1x1x1xi32>
    %220 = arith.cmpi sge, %208, %219 : i32
    %c524288_i32 = arith.constant 524288 : i32
    %221 = arith.ori %206, %c524288_i32 : i32
    %222 = arith.select %220, %221, %206 : i32
    %223 = arith.subi %208, %219 : i32
    %224 = arith.select %220, %223, %208 : i32
    %c-262144_i32 = arith.constant -262144 : i32
    %225 = vector.broadcast %c-262144_i32 : i32 to vector<2x8x16xi32>
    %226 = arith.andi %16, %225 : vector<2x8x16xi32>
    %227 = vector.broadcast %222 : i32 to vector<2x8x16xi32>
    %228 = arith.cmpi eq, %226, %227 : vector<2x8x16xi32>
    %c1_i32_47 = arith.constant 1 : i32
    %c0_i32_48 = arith.constant 0 : i32
    %229 = vector.broadcast %c1_i32_47 : i32 to vector<2x8x16xi32>
    %230 = vector.broadcast %c0_i32_48 : i32 to vector<2x8x16xi32>
    %231 = arith.select %228, %229, %230 : vector<2x8x16xi1>, vector<2x8x16xi32>
    %232 = vector.shape_cast %231 : vector<2x8x16xi32> to vector<1x2x8x16xi32>
    %cst_49 = arith.constant dense<0> : vector<1xi32>
    %233 = vector.multi_reduction <add>, %232, %cst_49 [1, 2, 3] : vector<1x2x8x16xi32> to vector<1xi32>
    %234 = vector.shape_cast %233 : vector<1xi32> to vector<1x1x1x1xi32>
    %235 = vector.extract %234[0, 0, 0, 0] : i32 from vector<1x1x1x1xi32>
    %236 = arith.cmpi sge, %224, %235 : i32
    %c262144_i32 = arith.constant 262144 : i32
    %237 = arith.ori %222, %c262144_i32 : i32
    %238 = arith.select %236, %237, %222 : i32
    %239 = arith.subi %224, %235 : i32
    %240 = arith.select %236, %239, %224 : i32
    %c-131072_i32 = arith.constant -131072 : i32
    %241 = vector.broadcast %c-131072_i32 : i32 to vector<2x8x16xi32>
    %242 = arith.andi %16, %241 : vector<2x8x16xi32>
    %243 = vector.broadcast %238 : i32 to vector<2x8x16xi32>
    %244 = arith.cmpi eq, %242, %243 : vector<2x8x16xi32>
    %c1_i32_50 = arith.constant 1 : i32
    %c0_i32_51 = arith.constant 0 : i32
    %245 = vector.broadcast %c1_i32_50 : i32 to vector<2x8x16xi32>
    %246 = vector.broadcast %c0_i32_51 : i32 to vector<2x8x16xi32>
    %247 = arith.select %244, %245, %246 : vector<2x8x16xi1>, vector<2x8x16xi32>
    %248 = vector.shape_cast %247 : vector<2x8x16xi32> to vector<1x2x8x16xi32>
    %cst_52 = arith.constant dense<0> : vector<1xi32>
    %249 = vector.multi_reduction <add>, %248, %cst_52 [1, 2, 3] : vector<1x2x8x16xi32> to vector<1xi32>
    %250 = vector.shape_cast %249 : vector<1xi32> to vector<1x1x1x1xi32>
    %251 = vector.extract %250[0, 0, 0, 0] : i32 from vector<1x1x1x1xi32>
    %252 = arith.cmpi sge, %240, %251 : i32
    %c131072_i32 = arith.constant 131072 : i32
    %253 = arith.ori %238, %c131072_i32 : i32
    %254 = arith.select %252, %253, %238 : i32
    %255 = arith.subi %240, %251 : i32
    %256 = arith.select %252, %255, %240 : i32
    %c-65536_i32 = arith.constant -65536 : i32
    %257 = vector.broadcast %c-65536_i32 : i32 to vector<2x8x16xi32>
    %258 = arith.andi %16, %257 : vector<2x8x16xi32>
    %259 = vector.broadcast %254 : i32 to vector<2x8x16xi32>
    %260 = arith.cmpi eq, %258, %259 : vector<2x8x16xi32>
    %c1_i32_53 = arith.constant 1 : i32
    %c0_i32_54 = arith.constant 0 : i32
    %261 = vector.broadcast %c1_i32_53 : i32 to vector<2x8x16xi32>
    %262 = vector.broadcast %c0_i32_54 : i32 to vector<2x8x16xi32>
    %263 = arith.select %260, %261, %262 : vector<2x8x16xi1>, vector<2x8x16xi32>
    %264 = vector.shape_cast %263 : vector<2x8x16xi32> to vector<1x2x8x16xi32>
    %cst_55 = arith.constant dense<0> : vector<1xi32>
    %265 = vector.multi_reduction <add>, %264, %cst_55 [1, 2, 3] : vector<1x2x8x16xi32> to vector<1xi32>
    %266 = vector.shape_cast %265 : vector<1xi32> to vector<1x1x1x1xi32>
    %267 = vector.extract %266[0, 0, 0, 0] : i32 from vector<1x1x1x1xi32>
    %268 = arith.cmpi sge, %256, %267 : i32
    %c65536_i32 = arith.constant 65536 : i32
    %269 = arith.ori %254, %c65536_i32 : i32
    %270 = arith.select %268, %269, %254 : i32
    %271 = arith.subi %256, %267 : i32
    %272 = arith.select %268, %271, %256 : i32
    %c-32768_i32 = arith.constant -32768 : i32
    %273 = vector.broadcast %c-32768_i32 : i32 to vector<2x8x16xi32>
    %274 = arith.andi %16, %273 : vector<2x8x16xi32>
    %275 = vector.broadcast %270 : i32 to vector<2x8x16xi32>
    %276 = arith.cmpi eq, %274, %275 : vector<2x8x16xi32>
    %c1_i32_56 = arith.constant 1 : i32
    %c0_i32_57 = arith.constant 0 : i32
    %277 = vector.broadcast %c1_i32_56 : i32 to vector<2x8x16xi32>
    %278 = vector.broadcast %c0_i32_57 : i32 to vector<2x8x16xi32>
    %279 = arith.select %276, %277, %278 : vector<2x8x16xi1>, vector<2x8x16xi32>
    %280 = vector.shape_cast %279 : vector<2x8x16xi32> to vector<1x2x8x16xi32>
    %cst_58 = arith.constant dense<0> : vector<1xi32>
    %281 = vector.multi_reduction <add>, %280, %cst_58 [1, 2, 3] : vector<1x2x8x16xi32> to vector<1xi32>
    %282 = vector.shape_cast %281 : vector<1xi32> to vector<1x1x1x1xi32>
    %283 = vector.extract %282[0, 0, 0, 0] : i32 from vector<1x1x1x1xi32>
    %284 = arith.cmpi sge, %272, %283 : i32
    %c32768_i32 = arith.constant 32768 : i32
    %285 = arith.ori %270, %c32768_i32 : i32
    %286 = arith.select %284, %285, %270 : i32
    %287 = arith.subi %272, %283 : i32
    %288 = arith.select %284, %287, %272 : i32
    %c-16384_i32 = arith.constant -16384 : i32
    %289 = vector.broadcast %c-16384_i32 : i32 to vector<2x8x16xi32>
    %290 = arith.andi %16, %289 : vector<2x8x16xi32>
    %291 = vector.broadcast %286 : i32 to vector<2x8x16xi32>
    %292 = arith.cmpi eq, %290, %291 : vector<2x8x16xi32>
    %c1_i32_59 = arith.constant 1 : i32
    %c0_i32_60 = arith.constant 0 : i32
    %293 = vector.broadcast %c1_i32_59 : i32 to vector<2x8x16xi32>
    %294 = vector.broadcast %c0_i32_60 : i32 to vector<2x8x16xi32>
    %295 = arith.select %292, %293, %294 : vector<2x8x16xi1>, vector<2x8x16xi32>
    %296 = vector.shape_cast %295 : vector<2x8x16xi32> to vector<1x2x8x16xi32>
    %cst_61 = arith.constant dense<0> : vector<1xi32>
    %297 = vector.multi_reduction <add>, %296, %cst_61 [1, 2, 3] : vector<1x2x8x16xi32> to vector<1xi32>
    %298 = vector.shape_cast %297 : vector<1xi32> to vector<1x1x1x1xi32>
    %299 = vector.extract %298[0, 0, 0, 0] : i32 from vector<1x1x1x1xi32>
    %300 = arith.cmpi sge, %288, %299 : i32
    %c16384_i32 = arith.constant 16384 : i32
    %301 = arith.ori %286, %c16384_i32 : i32
    %302 = arith.select %300, %301, %286 : i32
    %303 = arith.subi %288, %299 : i32
    %304 = arith.select %300, %303, %288 : i32
    %c-8192_i32 = arith.constant -8192 : i32
    %305 = vector.broadcast %c-8192_i32 : i32 to vector<2x8x16xi32>
    %306 = arith.andi %16, %305 : vector<2x8x16xi32>
    %307 = vector.broadcast %302 : i32 to vector<2x8x16xi32>
    %308 = arith.cmpi eq, %306, %307 : vector<2x8x16xi32>
    %c1_i32_62 = arith.constant 1 : i32
    %c0_i32_63 = arith.constant 0 : i32
    %309 = vector.broadcast %c1_i32_62 : i32 to vector<2x8x16xi32>
    %310 = vector.broadcast %c0_i32_63 : i32 to vector<2x8x16xi32>
    %311 = arith.select %308, %309, %310 : vector<2x8x16xi1>, vector<2x8x16xi32>
    %312 = vector.shape_cast %311 : vector<2x8x16xi32> to vector<1x2x8x16xi32>
    %cst_64 = arith.constant dense<0> : vector<1xi32>
    %313 = vector.multi_reduction <add>, %312, %cst_64 [1, 2, 3] : vector<1x2x8x16xi32> to vector<1xi32>
    %314 = vector.shape_cast %313 : vector<1xi32> to vector<1x1x1x1xi32>
    %315 = vector.extract %314[0, 0, 0, 0] : i32 from vector<1x1x1x1xi32>
    %316 = arith.cmpi sge, %304, %315 : i32
    %c8192_i32 = arith.constant 8192 : i32
    %317 = arith.ori %302, %c8192_i32 : i32
    %318 = arith.select %316, %317, %302 : i32
    %319 = arith.subi %304, %315 : i32
    %320 = arith.select %316, %319, %304 : i32
    %c-4096_i32 = arith.constant -4096 : i32
    %321 = vector.broadcast %c-4096_i32 : i32 to vector<2x8x16xi32>
    %322 = arith.andi %16, %321 : vector<2x8x16xi32>
    %323 = vector.broadcast %318 : i32 to vector<2x8x16xi32>
    %324 = arith.cmpi eq, %322, %323 : vector<2x8x16xi32>
    %c1_i32_65 = arith.constant 1 : i32
    %c0_i32_66 = arith.constant 0 : i32
    %325 = vector.broadcast %c1_i32_65 : i32 to vector<2x8x16xi32>
    %326 = vector.broadcast %c0_i32_66 : i32 to vector<2x8x16xi32>
    %327 = arith.select %324, %325, %326 : vector<2x8x16xi1>, vector<2x8x16xi32>
    %328 = vector.shape_cast %327 : vector<2x8x16xi32> to vector<1x2x8x16xi32>
    %cst_67 = arith.constant dense<0> : vector<1xi32>
    %329 = vector.multi_reduction <add>, %328, %cst_67 [1, 2, 3] : vector<1x2x8x16xi32> to vector<1xi32>
    %330 = vector.shape_cast %329 : vector<1xi32> to vector<1x1x1x1xi32>
    %331 = vector.extract %330[0, 0, 0, 0] : i32 from vector<1x1x1x1xi32>
    %332 = arith.cmpi sge, %320, %331 : i32
    %c4096_i32 = arith.constant 4096 : i32
    %333 = arith.ori %318, %c4096_i32 : i32
    %334 = arith.select %332, %333, %318 : i32
    %335 = arith.subi %320, %331 : i32
    %336 = arith.select %332, %335, %320 : i32
    %c-2048_i32 = arith.constant -2048 : i32
    %337 = vector.broadcast %c-2048_i32 : i32 to vector<2x8x16xi32>
    %338 = arith.andi %16, %337 : vector<2x8x16xi32>
    %339 = vector.broadcast %334 : i32 to vector<2x8x16xi32>
    %340 = arith.cmpi eq, %338, %339 : vector<2x8x16xi32>
    %c1_i32_68 = arith.constant 1 : i32
    %c0_i32_69 = arith.constant 0 : i32
    %341 = vector.broadcast %c1_i32_68 : i32 to vector<2x8x16xi32>
    %342 = vector.broadcast %c0_i32_69 : i32 to vector<2x8x16xi32>
    %343 = arith.select %340, %341, %342 : vector<2x8x16xi1>, vector<2x8x16xi32>
    %344 = vector.shape_cast %343 : vector<2x8x16xi32> to vector<1x2x8x16xi32>
    %cst_70 = arith.constant dense<0> : vector<1xi32>
    %345 = vector.multi_reduction <add>, %344, %cst_70 [1, 2, 3] : vector<1x2x8x16xi32> to vector<1xi32>
    %346 = vector.shape_cast %345 : vector<1xi32> to vector<1x1x1x1xi32>
    %347 = vector.extract %346[0, 0, 0, 0] : i32 from vector<1x1x1x1xi32>
    %348 = arith.cmpi sge, %336, %347 : i32
    %c2048_i32 = arith.constant 2048 : i32
    %349 = arith.ori %334, %c2048_i32 : i32
    %350 = arith.select %348, %349, %334 : i32
    %351 = arith.subi %336, %347 : i32
    %352 = arith.select %348, %351, %336 : i32
    %c-1024_i32 = arith.constant -1024 : i32
    %353 = vector.broadcast %c-1024_i32 : i32 to vector<2x8x16xi32>
    %354 = arith.andi %16, %353 : vector<2x8x16xi32>
    %355 = vector.broadcast %350 : i32 to vector<2x8x16xi32>
    %356 = arith.cmpi eq, %354, %355 : vector<2x8x16xi32>
    %c1_i32_71 = arith.constant 1 : i32
    %c0_i32_72 = arith.constant 0 : i32
    %357 = vector.broadcast %c1_i32_71 : i32 to vector<2x8x16xi32>
    %358 = vector.broadcast %c0_i32_72 : i32 to vector<2x8x16xi32>
    %359 = arith.select %356, %357, %358 : vector<2x8x16xi1>, vector<2x8x16xi32>
    %360 = vector.shape_cast %359 : vector<2x8x16xi32> to vector<1x2x8x16xi32>
    %cst_73 = arith.constant dense<0> : vector<1xi32>
    %361 = vector.multi_reduction <add>, %360, %cst_73 [1, 2, 3] : vector<1x2x8x16xi32> to vector<1xi32>
    %362 = vector.shape_cast %361 : vector<1xi32> to vector<1x1x1x1xi32>
    %363 = vector.extract %362[0, 0, 0, 0] : i32 from vector<1x1x1x1xi32>
    %364 = arith.cmpi sge, %352, %363 : i32
    %c1024_i32 = arith.constant 1024 : i32
    %365 = arith.ori %350, %c1024_i32 : i32
    %366 = arith.select %364, %365, %350 : i32
    %367 = arith.subi %352, %363 : i32
    %368 = arith.select %364, %367, %352 : i32
    %c-512_i32 = arith.constant -512 : i32
    %369 = vector.broadcast %c-512_i32 : i32 to vector<2x8x16xi32>
    %370 = arith.andi %16, %369 : vector<2x8x16xi32>
    %371 = vector.broadcast %366 : i32 to vector<2x8x16xi32>
    %372 = arith.cmpi eq, %370, %371 : vector<2x8x16xi32>
    %c1_i32_74 = arith.constant 1 : i32
    %c0_i32_75 = arith.constant 0 : i32
    %373 = vector.broadcast %c1_i32_74 : i32 to vector<2x8x16xi32>
    %374 = vector.broadcast %c0_i32_75 : i32 to vector<2x8x16xi32>
    %375 = arith.select %372, %373, %374 : vector<2x8x16xi1>, vector<2x8x16xi32>
    %376 = vector.shape_cast %375 : vector<2x8x16xi32> to vector<1x2x8x16xi32>
    %cst_76 = arith.constant dense<0> : vector<1xi32>
    %377 = vector.multi_reduction <add>, %376, %cst_76 [1, 2, 3] : vector<1x2x8x16xi32> to vector<1xi32>
    %378 = vector.shape_cast %377 : vector<1xi32> to vector<1x1x1x1xi32>
    %379 = vector.extract %378[0, 0, 0, 0] : i32 from vector<1x1x1x1xi32>
    %380 = arith.cmpi sge, %368, %379 : i32
    %c512_i32 = arith.constant 512 : i32
    %381 = arith.ori %366, %c512_i32 : i32
    %382 = arith.select %380, %381, %366 : i32
    %383 = arith.subi %368, %379 : i32
    %384 = arith.select %380, %383, %368 : i32
    %c-256_i32 = arith.constant -256 : i32
    %385 = vector.broadcast %c-256_i32 : i32 to vector<2x8x16xi32>
    %386 = arith.andi %16, %385 : vector<2x8x16xi32>
    %387 = vector.broadcast %382 : i32 to vector<2x8x16xi32>
    %388 = arith.cmpi eq, %386, %387 : vector<2x8x16xi32>
    %c1_i32_77 = arith.constant 1 : i32
    %c0_i32_78 = arith.constant 0 : i32
    %389 = vector.broadcast %c1_i32_77 : i32 to vector<2x8x16xi32>
    %390 = vector.broadcast %c0_i32_78 : i32 to vector<2x8x16xi32>
    %391 = arith.select %388, %389, %390 : vector<2x8x16xi1>, vector<2x8x16xi32>
    %392 = vector.shape_cast %391 : vector<2x8x16xi32> to vector<1x2x8x16xi32>
    %cst_79 = arith.constant dense<0> : vector<1xi32>
    %393 = vector.multi_reduction <add>, %392, %cst_79 [1, 2, 3] : vector<1x2x8x16xi32> to vector<1xi32>
    %394 = vector.shape_cast %393 : vector<1xi32> to vector<1x1x1x1xi32>
    %395 = vector.extract %394[0, 0, 0, 0] : i32 from vector<1x1x1x1xi32>
    %396 = arith.cmpi sge, %384, %395 : i32
    %c256_i32 = arith.constant 256 : i32
    %397 = arith.ori %382, %c256_i32 : i32
    %398 = arith.select %396, %397, %382 : i32
    %399 = arith.subi %384, %395 : i32
    %400 = arith.select %396, %399, %384 : i32
    %c-128_i32 = arith.constant -128 : i32
    %401 = vector.broadcast %c-128_i32 : i32 to vector<2x8x16xi32>
    %402 = arith.andi %16, %401 : vector<2x8x16xi32>
    %403 = vector.broadcast %398 : i32 to vector<2x8x16xi32>
    %404 = arith.cmpi eq, %402, %403 : vector<2x8x16xi32>
    %c1_i32_80 = arith.constant 1 : i32
    %c0_i32_81 = arith.constant 0 : i32
    %405 = vector.broadcast %c1_i32_80 : i32 to vector<2x8x16xi32>
    %406 = vector.broadcast %c0_i32_81 : i32 to vector<2x8x16xi32>
    %407 = arith.select %404, %405, %406 : vector<2x8x16xi1>, vector<2x8x16xi32>
    %408 = vector.shape_cast %407 : vector<2x8x16xi32> to vector<1x2x8x16xi32>
    %cst_82 = arith.constant dense<0> : vector<1xi32>
    %409 = vector.multi_reduction <add>, %408, %cst_82 [1, 2, 3] : vector<1x2x8x16xi32> to vector<1xi32>
    %410 = vector.shape_cast %409 : vector<1xi32> to vector<1x1x1x1xi32>
    %411 = vector.extract %410[0, 0, 0, 0] : i32 from vector<1x1x1x1xi32>
    %412 = arith.cmpi sge, %400, %411 : i32
    %c128_i32 = arith.constant 128 : i32
    %413 = arith.ori %398, %c128_i32 : i32
    %414 = arith.select %412, %413, %398 : i32
    %415 = arith.subi %400, %411 : i32
    %416 = arith.select %412, %415, %400 : i32
    %c-64_i32 = arith.constant -64 : i32
    %417 = vector.broadcast %c-64_i32 : i32 to vector<2x8x16xi32>
    %418 = arith.andi %16, %417 : vector<2x8x16xi32>
    %419 = vector.broadcast %414 : i32 to vector<2x8x16xi32>
    %420 = arith.cmpi eq, %418, %419 : vector<2x8x16xi32>
    %c1_i32_83 = arith.constant 1 : i32
    %c0_i32_84 = arith.constant 0 : i32
    %421 = vector.broadcast %c1_i32_83 : i32 to vector<2x8x16xi32>
    %422 = vector.broadcast %c0_i32_84 : i32 to vector<2x8x16xi32>
    %423 = arith.select %420, %421, %422 : vector<2x8x16xi1>, vector<2x8x16xi32>
    %424 = vector.shape_cast %423 : vector<2x8x16xi32> to vector<1x2x8x16xi32>
    %cst_85 = arith.constant dense<0> : vector<1xi32>
    %425 = vector.multi_reduction <add>, %424, %cst_85 [1, 2, 3] : vector<1x2x8x16xi32> to vector<1xi32>
    %426 = vector.shape_cast %425 : vector<1xi32> to vector<1x1x1x1xi32>
    %427 = vector.extract %426[0, 0, 0, 0] : i32 from vector<1x1x1x1xi32>
    %428 = arith.cmpi sge, %416, %427 : i32
    %c64_i32 = arith.constant 64 : i32
    %429 = arith.ori %414, %c64_i32 : i32
    %430 = arith.select %428, %429, %414 : i32
    %431 = arith.subi %416, %427 : i32
    %432 = arith.select %428, %431, %416 : i32
    %c-32_i32 = arith.constant -32 : i32
    %433 = vector.broadcast %c-32_i32 : i32 to vector<2x8x16xi32>
    %434 = arith.andi %16, %433 : vector<2x8x16xi32>
    %435 = vector.broadcast %430 : i32 to vector<2x8x16xi32>
    %436 = arith.cmpi eq, %434, %435 : vector<2x8x16xi32>
    %c1_i32_86 = arith.constant 1 : i32
    %c0_i32_87 = arith.constant 0 : i32
    %437 = vector.broadcast %c1_i32_86 : i32 to vector<2x8x16xi32>
    %438 = vector.broadcast %c0_i32_87 : i32 to vector<2x8x16xi32>
    %439 = arith.select %436, %437, %438 : vector<2x8x16xi1>, vector<2x8x16xi32>
    %440 = vector.shape_cast %439 : vector<2x8x16xi32> to vector<1x2x8x16xi32>
    %cst_88 = arith.constant dense<0> : vector<1xi32>
    %441 = vector.multi_reduction <add>, %440, %cst_88 [1, 2, 3] : vector<1x2x8x16xi32> to vector<1xi32>
    %442 = vector.shape_cast %441 : vector<1xi32> to vector<1x1x1x1xi32>
    %443 = vector.extract %442[0, 0, 0, 0] : i32 from vector<1x1x1x1xi32>
    %444 = arith.cmpi sge, %432, %443 : i32
    %c32_i32 = arith.constant 32 : i32
    %445 = arith.ori %430, %c32_i32 : i32
    %446 = arith.select %444, %445, %430 : i32
    %447 = arith.subi %432, %443 : i32
    %448 = arith.select %444, %447, %432 : i32
    %c-16_i32 = arith.constant -16 : i32
    %449 = vector.broadcast %c-16_i32 : i32 to vector<2x8x16xi32>
    %450 = arith.andi %16, %449 : vector<2x8x16xi32>
    %451 = vector.broadcast %446 : i32 to vector<2x8x16xi32>
    %452 = arith.cmpi eq, %450, %451 : vector<2x8x16xi32>
    %c1_i32_89 = arith.constant 1 : i32
    %c0_i32_90 = arith.constant 0 : i32
    %453 = vector.broadcast %c1_i32_89 : i32 to vector<2x8x16xi32>
    %454 = vector.broadcast %c0_i32_90 : i32 to vector<2x8x16xi32>
    %455 = arith.select %452, %453, %454 : vector<2x8x16xi1>, vector<2x8x16xi32>
    %456 = vector.shape_cast %455 : vector<2x8x16xi32> to vector<1x2x8x16xi32>
    %cst_91 = arith.constant dense<0> : vector<1xi32>
    %457 = vector.multi_reduction <add>, %456, %cst_91 [1, 2, 3] : vector<1x2x8x16xi32> to vector<1xi32>
    %458 = vector.shape_cast %457 : vector<1xi32> to vector<1x1x1x1xi32>
    %459 = vector.extract %458[0, 0, 0, 0] : i32 from vector<1x1x1x1xi32>
    %460 = arith.cmpi sge, %448, %459 : i32
    %c16_i32 = arith.constant 16 : i32
    %461 = arith.ori %446, %c16_i32 : i32
    %462 = arith.select %460, %461, %446 : i32
    %463 = arith.subi %448, %459 : i32
    %464 = arith.select %460, %463, %448 : i32
    %c-8_i32 = arith.constant -8 : i32
    %465 = vector.broadcast %c-8_i32 : i32 to vector<2x8x16xi32>
    %466 = arith.andi %16, %465 : vector<2x8x16xi32>
    %467 = vector.broadcast %462 : i32 to vector<2x8x16xi32>
    %468 = arith.cmpi eq, %466, %467 : vector<2x8x16xi32>
    %c1_i32_92 = arith.constant 1 : i32
    %c0_i32_93 = arith.constant 0 : i32
    %469 = vector.broadcast %c1_i32_92 : i32 to vector<2x8x16xi32>
    %470 = vector.broadcast %c0_i32_93 : i32 to vector<2x8x16xi32>
    %471 = arith.select %468, %469, %470 : vector<2x8x16xi1>, vector<2x8x16xi32>
    %472 = vector.shape_cast %471 : vector<2x8x16xi32> to vector<1x2x8x16xi32>
    %cst_94 = arith.constant dense<0> : vector<1xi32>
    %473 = vector.multi_reduction <add>, %472, %cst_94 [1, 2, 3] : vector<1x2x8x16xi32> to vector<1xi32>
    %474 = vector.shape_cast %473 : vector<1xi32> to vector<1x1x1x1xi32>
    %475 = vector.extract %474[0, 0, 0, 0] : i32 from vector<1x1x1x1xi32>
    %476 = arith.cmpi sge, %464, %475 : i32
    %c8_i32 = arith.constant 8 : i32
    %477 = arith.ori %462, %c8_i32 : i32
    %478 = arith.select %476, %477, %462 : i32
    %479 = arith.subi %464, %475 : i32
    %480 = arith.select %476, %479, %464 : i32
    %c-4_i32 = arith.constant -4 : i32
    %481 = vector.broadcast %c-4_i32 : i32 to vector<2x8x16xi32>
    %482 = arith.andi %16, %481 : vector<2x8x16xi32>
    %483 = vector.broadcast %478 : i32 to vector<2x8x16xi32>
    %484 = arith.cmpi eq, %482, %483 : vector<2x8x16xi32>
    %c1_i32_95 = arith.constant 1 : i32
    %c0_i32_96 = arith.constant 0 : i32
    %485 = vector.broadcast %c1_i32_95 : i32 to vector<2x8x16xi32>
    %486 = vector.broadcast %c0_i32_96 : i32 to vector<2x8x16xi32>
    %487 = arith.select %484, %485, %486 : vector<2x8x16xi1>, vector<2x8x16xi32>
    %488 = vector.shape_cast %487 : vector<2x8x16xi32> to vector<1x2x8x16xi32>
    %cst_97 = arith.constant dense<0> : vector<1xi32>
    %489 = vector.multi_reduction <add>, %488, %cst_97 [1, 2, 3] : vector<1x2x8x16xi32> to vector<1xi32>
    %490 = vector.shape_cast %489 : vector<1xi32> to vector<1x1x1x1xi32>
    %491 = vector.extract %490[0, 0, 0, 0] : i32 from vector<1x1x1x1xi32>
    %492 = arith.cmpi sge, %480, %491 : i32
    %c4_i32 = arith.constant 4 : i32
    %493 = arith.ori %478, %c4_i32 : i32
    %494 = arith.select %492, %493, %478 : i32
    %495 = arith.subi %480, %491 : i32
    %496 = arith.select %492, %495, %480 : i32
    %c-2_i32 = arith.constant -2 : i32
    %497 = vector.broadcast %c-2_i32 : i32 to vector<2x8x16xi32>
    %498 = arith.andi %16, %497 : vector<2x8x16xi32>
    %499 = vector.broadcast %494 : i32 to vector<2x8x16xi32>
    %500 = arith.cmpi eq, %498, %499 : vector<2x8x16xi32>
    %c1_i32_98 = arith.constant 1 : i32
    %c0_i32_99 = arith.constant 0 : i32
    %501 = vector.broadcast %c1_i32_98 : i32 to vector<2x8x16xi32>
    %502 = vector.broadcast %c0_i32_99 : i32 to vector<2x8x16xi32>
    %503 = arith.select %500, %501, %502 : vector<2x8x16xi1>, vector<2x8x16xi32>
    %504 = vector.shape_cast %503 : vector<2x8x16xi32> to vector<1x2x8x16xi32>
    %cst_100 = arith.constant dense<0> : vector<1xi32>
    %505 = vector.multi_reduction <add>, %504, %cst_100 [1, 2, 3] : vector<1x2x8x16xi32> to vector<1xi32>
    %506 = vector.shape_cast %505 : vector<1xi32> to vector<1x1x1x1xi32>
    %507 = vector.extract %506[0, 0, 0, 0] : i32 from vector<1x1x1x1xi32>
    %508 = arith.cmpi sge, %496, %507 : i32
    %c2_i32_101 = arith.constant 2 : i32
    %509 = arith.ori %494, %c2_i32_101 : i32
    %510 = arith.select %508, %509, %494 : i32
    %511 = arith.subi %496, %507 : i32
    %512 = arith.select %508, %511, %496 : i32
    %c-1_i32_102 = arith.constant -1 : i32
    %513 = vector.broadcast %c-1_i32_102 : i32 to vector<2x8x16xi32>
    %514 = arith.andi %16, %513 : vector<2x8x16xi32>
    %515 = vector.broadcast %510 : i32 to vector<2x8x16xi32>
    %516 = arith.cmpi eq, %514, %515 : vector<2x8x16xi32>
    %c1_i32_103 = arith.constant 1 : i32
    %c0_i32_104 = arith.constant 0 : i32
    %517 = vector.broadcast %c1_i32_103 : i32 to vector<2x8x16xi32>
    %518 = vector.broadcast %c0_i32_104 : i32 to vector<2x8x16xi32>
    %519 = arith.select %516, %517, %518 : vector<2x8x16xi1>, vector<2x8x16xi32>
    %520 = vector.shape_cast %519 : vector<2x8x16xi32> to vector<1x2x8x16xi32>
    %cst_105 = arith.constant dense<0> : vector<1xi32>
    %521 = vector.multi_reduction <add>, %520, %cst_105 [1, 2, 3] : vector<1x2x8x16xi32> to vector<1xi32>
    %522 = vector.shape_cast %521 : vector<1xi32> to vector<1x1x1x1xi32>
    %523 = vector.extract %522[0, 0, 0, 0] : i32 from vector<1x1x1x1xi32>
    %524 = arith.cmpi sge, %512, %523 : i32
    %c1_i32_106 = arith.constant 1 : i32
    %525 = arith.ori %510, %c1_i32_106 : i32
    %526 = arith.select %524, %525, %510 : i32
    %527 = vector.broadcast %526 : i32 to vector<2x8x16xi32>
    %528 = arith.cmpi eq, %16, %527 : vector<2x8x16xi32>
    %529 = arith.andi %7, %528 : vector<2x8x16xi1>
    %cst_107 = arith.constant 0xFF800000 : f32
    %530 = vector.broadcast %cst_107 : f32 to vector<2x8x16xf32>
    %531 = arith.select %529, %0, %530 : vector<2x8x16xi1>, vector<2x8x16xf32>
    %532 = vector.shape_cast %531 : vector<2x8x16xf32> to vector<1x2x8x16xf32>
    %cst_108 = arith.constant dense<0xFF800000> : vector<1xf32>
    %533 = vector.multi_reduction <maximumf>, %532, %cst_108 [1, 2, 3] : vector<1x2x8x16xf32> to vector<1xf32>
    %534 = vector.shape_cast %533 : vector<1xf32> to vector<1x1x1x1xf32>
    %535 = vector.extract %534[0, 0, 0, 0] : f32 from vector<1x1x1x1xf32>
    %c0_109 = arith.constant 0 : index
    %536 = memref.load %arg1[%c0_109] : memref<1xf32, #tpu.memory_space<smem>>
    %537 = arith.subf %535, %536 : f32
    %538 = math.absf %537 : f32
    %539 = vector.broadcast %538 : f32 to vector<1x1xf32>
    %c0_110 = arith.constant 0 : index
    %c0_111 = arith.constant 0 : index
    %540 = vector.load %arg2[%c0_110, %c0_111] : memref<1x1xf32, #tpu.memory_space<vmem>>, vector<1x1xf32>
    tpu.vector_store %arg2[%c0_110, %c0_111], %539 {strides = array<i32>} : memref<1x1xf32, #tpu.memory_space<vmem>>, vector<1x1xf32>,
    return
  }
}

</mosaic_0001>

<bundles_post_ra>
// kernel: tpu_custom_call.1
= control target key start
LH: loop header
LB: loop body
LE: loop exit
PB: predicated region body
PF: predicated region fallthrough
CT: control target
= control target key end

     0   :  { %8 = vsyncpa [#allocation4], 0  ;;  %s1862_s0 = inlined_call_operand.hbm [shape: f32[2,8,16], index: 0, kind: input, shape index: {}]   ;;  %s1863_s1 = inlined_call_operand.<no memory space> [shape: f32[1], index: 1, kind: input, shape index: {}]   ;;  %s1864_s2 = inlined_call_operand.hbm [shape: f32[1,1], index: 2, kind: output, shape index: {}]  }
   0x1   :  { %9 = vsyncpa [#allocation5], 0  ;;  %s1292_s9 = smov [#allocation3]   ;;  %s1244_s13 = scalar_lea.hbm %s1862_s0, 256 }
   0x2   :  { %s15_s10 = sshll.u32 %s1292_s9, 4  ;;  %p1245_p0 = scmp.ne.s32.totalorder %s1862_s0, %s1244_s13  ;;  %s16_s10 = int_to_ptr.vmem [resolvable:$true] %s15_s10 }
   0x3   :  { %p1248_p1 = scmp.lt.u32.totalorder %s1244_s13, %s1862_s0 }
   0x5   :  { %p1250_p2 = pnand %p1248_p1, %p1245_p0 }
   0x7   :  { %1253 = shalt.err (!%p1250_p2)
}
   0x8   :  { %s1254_s18 = scalar_lea.vmem %s16_s10, 256  ;;  %p1259_p4 = scmp.lt.s32.totalorder %s16_s10, %s16_s10 }
   0x9   :  { %p1255_p3 = scmp.ne.s32.totalorder %s16_s10, %s1254_s18  ;;  %p1260_p5 = scmp.lt.s32.totalorder %s1254_s18, %s1254_s18 }
   0xb   :  { %p1261_p6 = por %p1260_p5, %p1259_p4 }
   0xd   :  { %p1262_p7 = pnand %p1261_p6, %p1255_p3 }
   0xf   :  { %1265 = shalt.err (!%p1262_p7)
}
  0x10   :  { %s1293_s19 = smov 128   ;;  %s1294_s20 = smov 8  }
  0x11   :  { %21 = dma.hbm_to_vmem [thread:$0]  %s1862_s0, 256, %s16_s10, [#allocation4], %s1293_s19, %s1293_s19, %s1294_s20  }
  0x12   :  { %1288 = dma.done.wait [#allocation4], 256  }
  0x13   :  { %1289 = vsyncadd [#allocation4], 4294967040  ;;  %v29_v0 = vlaneseq  ;;  %v27_v3 = vld [vmem:[#allocation3] sm:$0xff]  ;;  %v28_v4 = vld [vmem:[#allocation3 + $0x8] sm:$0xff]  ;;  %vm54_vm5 = vcmask 130048   ;;  %v1295_v16 = vmov 0  }
  0x14   :  { %vm38_vm2 = vcmp.lt.s32.totalorder %v27_v3, 0  ;;  %vm39_vm3 = vcmp.lt.s32.totalorder %v28_v4, 0  ;;  %v40_v5 = vxor.u32 4294967295, %v27_v3  ;;  %v41_v6 = vxor.u32 4294967295, %v28_v4 }
  0x15   :  { %v30_v1 = vshrl.u32 %v29_v0, 7  ;;  %v32_v2 = vand.u32 127, %v29_v0  ;;  %v42_v8 = vxor.u32 2147483648, %v27_v3  ;;  %v43_v9 = vxor.u32 2147483648, %v28_v4 }
  0x17   :  { %vm33_vm0 = vcmp.ge.s32.totalorder %v30_v1, 5  ;;  %vm34_vm1 = vcmp.eq.s32.totalorder %v32_v2, 11  ;;  %v44_v10 = vsel %vm38_vm2, %v40_v5, %v42_v8  ;;  %v45_v11 = vsel %vm39_vm3, %v41_v6, %v43_v9 }
  0x18   :  { %vm1324_vm4 = vmand %vm33_vm0, %vm34_vm1 }
  0x19   :  { %v1330_v12 = vsel %vm1324_vm4, %v44_v10, 4294967295  ;;  %v1334_v13 = vsel %vm1324_vm4, %v45_v11, 4294967295 }
  0x1a   :  { %v48_v14 = vand.u32 2147483648, %v1330_v12  ;;  %v49_v15 = vand.u32 2147483648, %v1334_v13  ;;  %v81_v38 = vand.u32 3221225472, %v1330_v12  ;;  %v82_v39 = vand.u32 3221225472, %v1334_v13 }
  0x1b   :  { %v115_v62 = vand.u32 3758096384, %v1330_v12  ;;  %v116_v63 = vand.u32 3758096384, %v1334_v13 }
  0x1c   :  { %vm50_vm6 = vcmp.eq.s32.totalorder %v48_v14, 0  ;;  %vm51_vm7 = vcmp.eq.s32.totalorder %v49_v15, 0 }
  0x1d   :  { %v52_v17 = vsel %vm50_vm6, 1, %v1295_v16  ;;  %v53_v18 = vsel %vm51_vm7, 1, %v1295_v16 }
  0x1e   :  { %v55_v19 = vsel %vm54_vm5, %v52_v17, 0  ;;  %v56_v20 = vsel %vm54_vm5, %v53_v18, 0 }
  0x1f   :  { %v57_v21 = vadd.s32 %v56_v20, %v55_v19 }
  0x21   :  { %v59_v22 = vshrl.u32 %v57_v21, 16  ;;  %v58_v23 = vand.u32 65535, %v57_v21 }
  0x23   :  { %v61_v24 = vcvt.s32.f32 %v59_v22  ;;  %v60_v25 = vcvt.s32.f32 %v58_v23 }
  0x25   :  { %64 = vadd.xlane.f32.xlu0 %v61_v24 }
  0x29   :  { %62 = vadd.xlane.f32.xlu0 %v60_v25 }
  0xb2   :  { %v65_v26 = vpop.xlane.xlu0 %64 }
  0xb3   :  { %v67_v27 = vcvt.f32.s32 %v65_v26  ;;  %v149_v26 = vand.u32 4026531840, %v1330_v12 }
  0xb5   :  { %v68_v29 = vshll.u32 %v67_v27, 16  ;;  %v150_v27 = vand.u32 4026531840, %v1334_v13 }
  0xb6   :  { %v63_v28 = vpop.xlane.xlu0 %62 }
  0xb7   :  { %v66_v30 = vcvt.f32.s32 %v63_v28 }
  0xb9   :  { %v69_v31 = vadd.s32 %v68_v29, %v66_v30 }
  0xbb   :  { %v70_v32 = vrot.slane %v69_v31, 4 }
  0xbd   :  { %v71_v33 = vadd.s32 %v70_v32, %v69_v31 }
  0xbf   :  { %v72_v34 = vrot.slane %v71_v33, 2 }
  0xc1   :  { %v73_v35 = vadd.s32 %v72_v34, %v71_v33 }
  0xc3   :  { %v74_v36 = vrot.slane %v73_v35, 1 }
  0xc5   :  { %v75_v37 = vadd.s32 %v74_v36, %v73_v35 }
  0xc7   :  { %1171 = vpush %v75_v37 }
  0xf8   :  { %s1342_s0 = spop %1171 }
  0xf9   :  { %p77_p8 = scmp.le.s32.totalorder %s1342_s0, 2  ;;  %s79_s24 = ssub.s32 2, %s1342_s0 }
  0xfb   :  { %s1349_s23 = scalar_select %p77_p8, 2147483648, 0 }
  0xfc   :  { %s1868_s24 = smov (!%p77_p8, %s79_s24), 2 }
  0xfd   :  { %v83_v40 = vstv %s1349_s23  ;;  %s111_s27 = sor.u32 1073741824, %s1349_s23 }
  0xfe   :  { %vm84_vm8 = vcmp.eq.s32.totalorder %v81_v38, %v83_v40  ;;  %vm85_vm9 = vcmp.eq.s32.totalorder %v82_v39, %v83_v40 }
  0xff   :  { %v86_v41 = vsel %vm84_vm8, 1, %v1295_v16  ;;  %v87_v42 = vsel %vm85_vm9, 1, %v1295_v16 }
 0x100   :  { %v88_v43 = vsel %vm54_vm5, %v86_v41, 0  ;;  %v89_v44 = vsel %vm54_vm5, %v87_v42, 0 }
 0x101   :  { %v90_v45 = vadd.s32 %v89_v44, %v88_v43 }
 0x103   :  { %v92_v46 = vshrl.u32 %v90_v45, 16  ;;  %v91_v48 = vand.u32 65535, %v90_v45 }
 0x105   :  { %v94_v47 = vcvt.s32.f32 %v92_v46  ;;  %v93_v49 = vcvt.s32.f32 %v91_v48 }
 0x107   :  { %97 = vadd.xlane.f32.xlu1 %v94_v47 }
 0x10b   :  { %95 = vadd.xlane.f32.xlu1 %v93_v49 }
 0x194   :  { %v98_v50 = vpop.xlane.xlu1 %97 }
 0x195   :  { %v100_v51 = vcvt.f32.s32 %v98_v50  ;;  %v183_v50 = vand.u32 4160749568, %v1330_v12 }
 0x197   :  { %v101_v53 = vshll.u32 %v100_v51, 16  ;;  %v184_v51 = vand.u32 4160749568, %v1334_v13 }
 0x198   :  { %v96_v52 = vpop.xlane.xlu1 %95 }
 0x199   :  { %v99_v54 = vcvt.f32.s32 %v96_v52 }
 0x19b   :  { %v102_v55 = vadd.s32 %v101_v53, %v99_v54 }
 0x19d   :  { %v103_v56 = vrot.slane %v102_v55, 4 }
 0x19f   :  { %v104_v57 = vadd.s32 %v103_v56, %v102_v55 }
 0x1a1   :  { %v105_v58 = vrot.slane %v104_v57, 2 }
 0x1a3   :  { %v106_v59 = vadd.s32 %v105_v58, %v104_v57 }
 0x1a5   :  { %v107_v60 = vrot.slane %v106_v59, 1 }
 0x1a7   :  { %v108_v61 = vadd.s32 %v107_v60, %v106_v59 }
 0x1a9   :  { %1173 = vpush %v108_v61 }
 0x1da   :  { %s1174_s25 = spop %1173 }
 0x1db   :  { %p110_p9 = scmp.ge.s32.totalorder %s1868_s24, %s1174_s25  ;;  %s113_s26 = ssub.s32 %s1868_s24, %s1174_s25 }
 0x1dd   :  { %s1870_s27 = smov (!%p110_p9, %s111_s27), %s1349_s23  ;;  %s1872_s26 = smov (!%p110_p9, %s113_s26), %s1868_s24 }
 0x1de   :  { %v117_v0 = vstv %s1870_s27  ;;  %s145_s30 = sor.u32 536870912, %s1870_s27 }
 0x1df   :  { %vm118_vm10 = vcmp.eq.s32.totalorder %v115_v62, %v117_v0  ;;  %vm119_vm11 = vcmp.eq.s32.totalorder %v116_v63, %v117_v0 }
 0x1e0   :  { %v120_v1 = vsel %vm118_vm10, 1, %v1295_v16  ;;  %v121_v2 = vsel %vm119_vm11, 1, %v1295_v16 }
 0x1e1   :  { %v122_v3 = vsel %vm54_vm5, %v120_v1, 0  ;;  %v123_v4 = vsel %vm54_vm5, %v121_v2, 0 }
 0x1e2   :  { %v124_v5 = vadd.s32 %v123_v4, %v122_v3 }
 0x1e4   :  { %v126_v6 = vshrl.u32 %v124_v5, 16  ;;  %v125_v8 = vand.u32 65535, %v124_v5 }
 0x1e6   :  { %v128_v9 = vcvt.s32.f32 %v126_v6  ;;  %v127_v10 = vcvt.s32.f32 %v125_v8 }
 0x1e8   :  { %131 = vadd.xlane.f32.xlu0 %v128_v9  ;;  %129 = vadd.xlane.f32.xlu1 %v127_v10 }
 0x275   :  { %v132_v11 = vpop.xlane.xlu0 %131  ;;  %v130_v14 = vpop.xlane.xlu1 %129 }
 0x276   :  { %v134_v15 = vcvt.f32.s32 %v132_v11  ;;  %v133_v18 = vcvt.f32.s32 %v130_v14  ;;  %v217_v11 = vand.u32 4227858432, %v1330_v12  ;;  %v218_v14 = vand.u32 4227858432, %v1334_v13 }
 0x278   :  { %v135_v17 = vshll.u32 %v134_v15, 16 }
 0x27a   :  { %v136_v19 = vadd.s32 %v135_v17, %v133_v18 }
 0x27c   :  { %v137_v20 = vrot.slane %v136_v19, 4 }
 0x27e   :  { %v138_v21 = vadd.s32 %v137_v20, %v136_v19 }
 0x280   :  { %v139_v22 = vrot.slane %v138_v21, 2 }
 0x282   :  { %v140_v23 = vadd.s32 %v139_v22, %v138_v21 }
 0x284   :  { %v141_v24 = vrot.slane %v140_v23, 1 }
 0x286   :  { %v142_v25 = vadd.s32 %v141_v24, %v140_v23 }
 0x288   :  { %1175 = vpush %v142_v25 }
 0x2b9   :  { %s1176_s28 = spop %1175 }
 0x2ba   :  { %p144_p10 = scmp.ge.s32.totalorder %s1872_s26, %s1176_s28  ;;  %s147_s29 = ssub.s32 %s1872_s26, %s1176_s28 }
 0x2bc   :  { %s1874_s30 = smov (!%p144_p10, %s145_s30), %s1870_s27  ;;  %s1876_s29 = smov (!%p144_p10, %s147_s29), %s1872_s26 }
 0x2bd   :  { %v151_v28 = vstv %s1874_s30  ;;  %s179_s5 = sor.u32 268435456, %s1874_s30 }
 0x2be   :  { %vm152_vm12 = vcmp.eq.s32.totalorder %v149_v26, %v151_v28  ;;  %vm153_vm13 = vcmp.eq.s32.totalorder %v150_v27, %v151_v28 }
 0x2bf   :  { %v154_v29 = vsel %vm152_vm12, 1, %v1295_v16  ;;  %v155_v30 = vsel %vm153_vm13, 1, %v1295_v16 }
 0x2c0   :  { %v156_v31 = vsel %vm54_vm5, %v154_v29, 0  ;;  %v157_v32 = vsel %vm54_vm5, %v155_v30, 0 }
 0x2c1   :  { %v158_v33 = vadd.s32 %v157_v32, %v156_v31 }
 0x2c3   :  { %v160_v34 = vshrl.u32 %v158_v33, 16  ;;  %v159_v35 = vand.u32 65535, %v158_v33 }
 0x2c5   :  { %v162_v36 = vcvt.s32.f32 %v160_v34  ;;  %v161_v37 = vcvt.s32.f32 %v159_v35 }
 0x2c7   :  { %165 = vadd.xlane.f32.xlu0 %v162_v36  ;;  %163 = vadd.xlane.f32.xlu1 %v161_v37 }
 0x354   :  { %v166_v38 = vpop.xlane.xlu0 %165  ;;  %v164_v39 = vpop.xlane.xlu1 %163 }
 0x355   :  { %v168_v40 = vcvt.f32.s32 %v166_v38  ;;  %v167_v42 = vcvt.f32.s32 %v164_v39  ;;  %v251_v38 = vand.u32 4261412864, %v1330_v12  ;;  %v252_v39 = vand.u32 4261412864, %v1334_v13 }
 0x357   :  { %v169_v41 = vshll.u32 %v168_v40, 16 }
 0x359   :  { %v170_v43 = vadd.s32 %v169_v41, %v167_v42 }
 0x35b   :  { %v171_v44 = vrot.slane %v170_v43, 4 }
 0x35d   :  { %v172_v45 = vadd.s32 %v171_v44, %v170_v43 }
 0x35f   :  { %v173_v46 = vrot.slane %v172_v45, 2 }
 0x361   :  { %v174_v47 = vadd.s32 %v173_v46, %v172_v45 }
 0x363   :  { %v175_v48 = vrot.slane %v174_v47, 1 }
 0x365   :  { %v176_v49 = vadd.s32 %v175_v48, %v174_v47 }
 0x367   :  { %1177 = vpush %v176_v49 }
 0x398   :  { %s1178_s3 = spop %1177 }
 0x399   :  { %p178_p11 = scmp.ge.s32.totalorder %s1876_s29, %s1178_s3  ;;  %s181_s4 = ssub.s32 %s1876_s29, %s1178_s3 }
 0x39b   :  { %s1878_s5 = smov (!%p178_p11, %s179_s5), %s1874_s30  ;;  %s1880_s4 = smov (!%p178_p11, %s181_s4), %s1876_s29 }
 0x39c   :  { %v185_v52 = vstv %s1878_s5  ;;  %s213_s8 = sor.u32 134217728, %s1878_s5 }
 0x39d   :  { %vm186_vm14 = vcmp.eq.s32.totalorder %v183_v50, %v185_v52  ;;  %vm187_vm15 = vcmp.eq.s32.totalorder %v184_v51, %v185_v52 }
 0x39e   :  { %v188_v53 = vsel %vm186_vm14, 1, %v1295_v16  ;;  %v189_v54 = vsel %vm187_vm15, 1, %v1295_v16 }
 0x39f   :  { %v190_v55 = vsel %vm54_vm5, %v188_v53, 0  ;;  %v191_v56 = vsel %vm54_vm5, %v189_v54, 0 }
 0x3a0   :  { %v192_v57 = vadd.s32 %v191_v56, %v190_v55 }
 0x3a2   :  { %v194_v58 = vshrl.u32 %v192_v57, 16  ;;  %v193_v59 = vand.u32 65535, %v192_v57 }
 0x3a4   :  { %v196_v60 = vcvt.s32.f32 %v194_v58  ;;  %v195_v61 = vcvt.s32.f32 %v193_v59 }
 0x3a6   :  { %199 = vadd.xlane.f32.xlu0 %v196_v60  ;;  %197 = vadd.xlane.f32.xlu1 %v195_v61 }
 0x433   :  { %v200_v62 = vpop.xlane.xlu0 %199  ;;  %v198_v63 = vpop.xlane.xlu1 %197 }
 0x434   :  { %v202_v0 = vcvt.f32.s32 %v200_v62  ;;  %v201_v2 = vcvt.f32.s32 %v198_v63  ;;  %v285_v62 = vand.u32 4278190080, %v1330_v12  ;;  %v286_v63 = vand.u32 4278190080, %v1334_v13 }
 0x436   :  { %v203_v1 = vshll.u32 %v202_v0, 16 }
 0x438   :  { %v204_v3 = vadd.s32 %v203_v1, %v201_v2 }
 0x43a   :  { %v205_v4 = vrot.slane %v204_v3, 4 }
 0x43c   :  { %v206_v5 = vadd.s32 %v205_v4, %v204_v3 }
 0x43e   :  { %v207_v6 = vrot.slane %v206_v5, 2 }
 0x440   :  { %v208_v8 = vadd.s32 %v207_v6, %v206_v5 }
 0x442   :  { %v209_v9 = vrot.slane %v208_v8, 1 }
 0x444   :  { %v210_v10 = vadd.s32 %v209_v9, %v208_v8 }
 0x446   :  { %1179 = vpush %v210_v10 }
 0x477   :  { %s1180_s6 = spop %1179 }
 0x478   :  { %p212_p12 = scmp.ge.s32.totalorder %s1880_s4, %s1180_s6  ;;  %s215_s7 = ssub.s32 %s1880_s4, %s1180_s6 }
 0x47a   :  { %s1882_s8 = smov (!%p212_p12, %s213_s8), %s1878_s5  ;;  %s1884_s7 = smov (!%p212_p12, %s215_s7), %s1880_s4 }
 0x47b   :  { %v219_v15 = vstv %s1882_s8  ;;  %s247_s11 = sor.u32 67108864, %s1882_s8 }
 0x47c   :  { %vm220_vm0 = vcmp.eq.s32.totalorder %v217_v11, %v219_v15  ;;  %vm221_vm1 = vcmp.eq.s32.totalorder %v218_v14, %v219_v15 }
 0x47d   :  { %v222_v17 = vsel %vm220_vm0, 1, %v1295_v16  ;;  %v223_v18 = vsel %vm221_vm1, 1, %v1295_v16 }
 0x47e   :  { %v224_v19 = vsel %vm54_vm5, %v222_v17, 0  ;;  %v225_v20 = vsel %vm54_vm5, %v223_v18, 0 }
 0x47f   :  { %v226_v21 = vadd.s32 %v225_v20, %v224_v19 }
 0x481   :  { %v228_v22 = vshrl.u32 %v226_v21, 16  ;;  %v227_v23 = vand.u32 65535, %v226_v21 }
 0x483   :  { %v230_v24 = vcvt.s32.f32 %v228_v22  ;;  %v229_v25 = vcvt.s32.f32 %v227_v23 }
 0x485   :  { %233 = vadd.xlane.f32.xlu0 %v230_v24  ;;  %231 = vadd.xlane.f32.xlu1 %v229_v25 }
 0x512   :  { %v234_v26 = vpop.xlane.xlu0 %233  ;;  %v232_v27 = vpop.xlane.xlu1 %231 }
 0x513   :  { %v236_v28 = vcvt.f32.s32 %v234_v26  ;;  %v235_v30 = vcvt.f32.s32 %v232_v27  ;;  %v319_v26 = vand.u32 4286578688, %v1330_v12  ;;  %v320_v27 = vand.u32 4286578688, %v1334_v13 }
 0x515   :  { %v237_v29 = vshll.u32 %v236_v28, 16 }
 0x517   :  { %v238_v31 = vadd.s32 %v237_v29, %v235_v30 }
 0x519   :  { %v239_v32 = vrot.slane %v238_v31, 4 }
 0x51b   :  { %v240_v33 = vadd.s32 %v239_v32, %v238_v31 }
 0x51d   :  { %v241_v34 = vrot.slane %v240_v33, 2 }
 0x51f   :  { %v242_v35 = vadd.s32 %v241_v34, %v240_v33 }
 0x521   :  { %v243_v36 = vrot.slane %v242_v35, 1 }
 0x523   :  { %v244_v37 = vadd.s32 %v243_v36, %v242_v35 }
 0x525   :  { %1181 = vpush %v244_v37 }
 0x556   :  { %s1182_s9 = spop %1181 }
 0x557   :  { %p246_p13 = scmp.ge.s32.totalorder %s1884_s7, %s1182_s9  ;;  %s249_s10 = ssub.s32 %s1884_s7, %s1182_s9 }
 0x559   :  { %s1886_s11 = smov (!%p246_p13, %s247_s11), %s1882_s8  ;;  %s1888_s10 = smov (!%p246_p13, %s249_s10), %s1884_s7 }
 0x55a   :  { %v253_v40 = vstv %s1886_s11  ;;  %s281_s14 = sor.u32 33554432, %s1886_s11 }
 0x55b   :  { %vm254_vm2 = vcmp.eq.s32.totalorder %v251_v38, %v253_v40  ;;  %vm255_vm3 = vcmp.eq.s32.totalorder %v252_v39, %v253_v40 }
 0x55c   :  { %v256_v41 = vsel %vm254_vm2, 1, %v1295_v16  ;;  %v257_v42 = vsel %vm255_vm3, 1, %v1295_v16 }
 0x55d   :  { %v258_v43 = vsel %vm54_vm5, %v256_v41, 0  ;;  %v259_v44 = vsel %vm54_vm5, %v257_v42, 0 }
 0x55e   :  { %v260_v45 = vadd.s32 %v259_v44, %v258_v43 }
 0x560   :  { %v262_v46 = vshrl.u32 %v260_v45, 16  ;;  %v261_v47 = vand.u32 65535, %v260_v45 }
 0x562   :  { %v264_v48 = vcvt.s32.f32 %v262_v46  ;;  %v263_v49 = vcvt.s32.f32 %v261_v47 }
 0x564   :  { %267 = vadd.xlane.f32.xlu0 %v264_v48  ;;  %265 = vadd.xlane.f32.xlu1 %v263_v49 }
 0x5f1   :  { %v268_v50 = vpop.xlane.xlu0 %267  ;;  %v266_v51 = vpop.xlane.xlu1 %265 }
 0x5f2   :  { %v270_v52 = vcvt.f32.s32 %v268_v50  ;;  %v269_v54 = vcvt.f32.s32 %v266_v51  ;;  %v353_v50 = vand.u32 4290772992, %v1330_v12  ;;  %v354_v51 = vand.u32 4290772992, %v1334_v13 }
 0x5f4   :  { %v271_v53 = vshll.u32 %v270_v52, 16 }
 0x5f6   :  { %v272_v55 = vadd.s32 %v271_v53, %v269_v54 }
 0x5f8   :  { %v273_v56 = vrot.slane %v272_v55, 4 }
 0x5fa   :  { %v274_v57 = vadd.s32 %v273_v56, %v272_v55 }
 0x5fc   :  { %v275_v58 = vrot.slane %v274_v57, 2 }
 0x5fe   :  { %v276_v59 = vadd.s32 %v275_v58, %v274_v57 }
 0x600   :  { %v277_v60 = vrot.slane %v276_v59, 1 }
 0x602   :  { %v278_v61 = vadd.s32 %v277_v60, %v276_v59 }
 0x604   :  { %1183 = vpush %v278_v61 }
 0x635   :  { %s1184_s12 = spop %1183 }
 0x636   :  { %p280_p0 = scmp.ge.s32.totalorder %s1888_s10, %s1184_s12  ;;  %s283_s13 = ssub.s32 %s1888_s10, %s1184_s12 }
 0x638   :  { %s1890_s14 = smov (!%p280_p0, %s281_s14), %s1886_s11  ;;  %s1892_s13 = smov (!%p280_p0, %s283_s13), %s1888_s10 }
 0x639   :  { %v287_v0 = vstv %s1890_s14  ;;  %s315_s17 = sor.u32 16777216, %s1890_s14 }
 0x63a   :  { %vm288_vm6 = vcmp.eq.s32.totalorder %v285_v62, %v287_v0  ;;  %vm289_vm7 = vcmp.eq.s32.totalorder %v286_v63, %v287_v0 }
 0x63b   :  { %v290_v1 = vsel %vm288_vm6, 1, %v1295_v16  ;;  %v291_v2 = vsel %vm289_vm7, 1, %v1295_v16 }
 0x63c   :  { %v292_v3 = vsel %vm54_vm5, %v290_v1, 0  ;;  %v293_v4 = vsel %vm54_vm5, %v291_v2, 0 }
 0x63d   :  { %v294_v5 = vadd.s32 %v293_v4, %v292_v3 }
 0x63f   :  { %v296_v6 = vshrl.u32 %v294_v5, 16  ;;  %v295_v8 = vand.u32 65535, %v294_v5 }
 0x641   :  { %v298_v9 = vcvt.s32.f32 %v296_v6  ;;  %v297_v10 = vcvt.s32.f32 %v295_v8 }
 0x643   :  { %301 = vadd.xlane.f32.xlu0 %v298_v9  ;;  %299 = vadd.xlane.f32.xlu1 %v297_v10 }
 0x6d0   :  { %v302_v11 = vpop.xlane.xlu0 %301  ;;  %v300_v14 = vpop.xlane.xlu1 %299 }
 0x6d1   :  { %v304_v15 = vcvt.f32.s32 %v302_v11  ;;  %v303_v18 = vcvt.f32.s32 %v300_v14  ;;  %v387_v11 = vand.u32 4292870144, %v1330_v12  ;;  %v388_v14 = vand.u32 4292870144, %v1334_v13 }
 0x6d3   :  { %v305_v17 = vshll.u32 %v304_v15, 16 }
 0x6d5   :  { %v306_v19 = vadd.s32 %v305_v17, %v303_v18 }
 0x6d7   :  { %v307_v20 = vrot.slane %v306_v19, 4 }
 0x6d9   :  { %v308_v21 = vadd.s32 %v307_v20, %v306_v19 }
 0x6db   :  { %v309_v22 = vrot.slane %v308_v21, 2 }
 0x6dd   :  { %v310_v23 = vadd.s32 %v309_v22, %v308_v21 }
 0x6df   :  { %v311_v24 = vrot.slane %v310_v23, 1 }
 0x6e1   :  { %v312_v25 = vadd.s32 %v311_v24, %v310_v23 }
 0x6e3   :  { %1185 = vpush %v312_v25 }
 0x714   :  { %s1186_s15 = spop %1185 }
 0x715   :  { %p314_p1 = scmp.ge.s32.totalorder %s1892_s13, %s1186_s15  ;;  %s317_s16 = ssub.s32 %s1892_s13, %s1186_s15 }
 0x717   :  { %s1894_s17 = smov (!%p314_p1, %s315_s17), %s1890_s14  ;;  %s1896_s16 = smov (!%p314_p1, %s317_s16), %s1892_s13 }
 0x718   :  { %v321_v28 = vstv %s1894_s17  ;;  %s349_s20 = sor.u32 8388608, %s1894_s17 }
 0x719   :  { %vm322_vm8 = vcmp.eq.s32.totalorder %v319_v26, %v321_v28  ;;  %vm323_vm9 = vcmp.eq.s32.totalorder %v320_v27, %v321_v28 }
 0x71a   :  { %v324_v29 = vsel %vm322_vm8, 1, %v1295_v16  ;;  %v325_v30 = vsel %vm323_vm9, 1, %v1295_v16 }
 0x71b   :  { %v326_v31 = vsel %vm54_vm5, %v324_v29, 0  ;;  %v327_v32 = vsel %vm54_vm5, %v325_v30, 0 }
 0x71c   :  { %v328_v33 = vadd.s32 %v327_v32, %v326_v31 }
 0x71e   :  { %v330_v34 = vshrl.u32 %v328_v33, 16  ;;  %v329_v35 = vand.u32 65535, %v328_v33 }
 0x720   :  { %v332_v36 = vcvt.s32.f32 %v330_v34  ;;  %v331_v37 = vcvt.s32.f32 %v329_v35 }
 0x722   :  { %335 = vadd.xlane.f32.xlu0 %v332_v36  ;;  %333 = vadd.xlane.f32.xlu1 %v331_v37 }
 0x7af   :  { %v336_v38 = vpop.xlane.xlu0 %335  ;;  %v334_v39 = vpop.xlane.xlu1 %333 }
 0x7b0   :  { %v338_v40 = vcvt.f32.s32 %v336_v38  ;;  %v337_v42 = vcvt.f32.s32 %v334_v39  ;;  %v421_v38 = vand.u32 4293918720, %v1330_v12  ;;  %v422_v39 = vand.u32 4293918720, %v1334_v13 }
 0x7b2   :  { %v339_v41 = vshll.u32 %v338_v40, 16 }
 0x7b4   :  { %v340_v43 = vadd.s32 %v339_v41, %v337_v42 }
 0x7b6   :  { %v341_v44 = vrot.slane %v340_v43, 4 }
 0x7b8   :  { %v342_v45 = vadd.s32 %v341_v44, %v340_v43 }
 0x7ba   :  { %v343_v46 = vrot.slane %v342_v45, 2 }
 0x7bc   :  { %v344_v47 = vadd.s32 %v343_v46, %v342_v45 }
 0x7be   :  { %v345_v48 = vrot.slane %v344_v47, 1 }
 0x7c0   :  { %v346_v49 = vadd.s32 %v345_v48, %v344_v47 }
 0x7c2   :  { %1187 = vpush %v346_v49 }
 0x7f3   :  { %s1188_s18 = spop %1187 }
 0x7f4   :  { %p348_p2 = scmp.ge.s32.totalorder %s1896_s16, %s1188_s18  ;;  %s351_s19 = ssub.s32 %s1896_s16, %s1188_s18 }
 0x7f6   :  { %s1898_s20 = smov (!%p348_p2, %s349_s20), %s1894_s17  ;;  %s1900_s19 = smov (!%p348_p2, %s351_s19), %s1896_s16 }
 0x7f7   :  { %v355_v52 = vstv %s1898_s20  ;;  %s383_s0 = sor.u32 4194304, %s1898_s20 }
 0x7f8   :  { %vm356_vm10 = vcmp.eq.s32.totalorder %v353_v50, %v355_v52  ;;  %vm357_vm11 = vcmp.eq.s32.totalorder %v354_v51, %v355_v52 }
 0x7f9   :  { %v358_v53 = vsel %vm356_vm10, 1, %v1295_v16  ;;  %v359_v54 = vsel %vm357_vm11, 1, %v1295_v16 }
 0x7fa   :  { %v360_v55 = vsel %vm54_vm5, %v358_v53, 0  ;;  %v361_v56 = vsel %vm54_vm5, %v359_v54, 0 }
 0x7fb   :  { %v362_v57 = vadd.s32 %v361_v56, %v360_v55 }
 0x7fd   :  { %v364_v58 = vshrl.u32 %v362_v57, 16  ;;  %v363_v59 = vand.u32 65535, %v362_v57 }
 0x7ff   :  { %v366_v60 = vcvt.s32.f32 %v364_v58  ;;  %v365_v61 = vcvt.s32.f32 %v363_v59 }
 0x801   :  { %369 = vadd.xlane.f32.xlu0 %v366_v60  ;;  %367 = vadd.xlane.f32.xlu1 %v365_v61 }
 0x88e   :  { %v370_v62 = vpop.xlane.xlu0 %369  ;;  %v368_v63 = vpop.xlane.xlu1 %367 }
 0x88f   :  { %v372_v0 = vcvt.f32.s32 %v370_v62  ;;  %v371_v2 = vcvt.f32.s32 %v368_v63  ;;  %v455_v62 = vand.u32 4294443008, %v1330_v12  ;;  %v456_v63 = vand.u32 4294443008, %v1334_v13 }
 0x891   :  { %v373_v1 = vshll.u32 %v372_v0, 16 }
 0x893   :  { %v374_v3 = vadd.s32 %v373_v1, %v371_v2 }
 0x895   :  { %v375_v4 = vrot.slane %v374_v3, 4 }
 0x897   :  { %v376_v5 = vadd.s32 %v375_v4, %v374_v3 }
 0x899   :  { %v377_v6 = vrot.slane %v376_v5, 2 }
 0x89b   :  { %v378_v8 = vadd.s32 %v377_v6, %v376_v5 }
 0x89d   :  { %v379_v9 = vrot.slane %v378_v8, 1 }
 0x89f   :  { %v380_v10 = vadd.s32 %v379_v9, %v378_v8 }
 0x8a1   :  { %1189 = vpush %v380_v10 }
 0x8d2   :  { %s1190_s21 = spop %1189 }
 0x8d3   :  { %p382_p3 = scmp.ge.s32.totalorder %s1900_s19, %s1190_s21  ;;  %s385_s22 = ssub.s32 %s1900_s19, %s1190_s21 }
 0x8d5   :  { %s1902_s0 = smov (!%p382_p3, %s383_s0), %s1898_s20  ;;  %s1904_s22 = smov (!%p382_p3, %s385_s22), %s1900_s19 }
 0x8d6   :  { %v389_v15 = vstv %s1902_s0  ;;  %s417_s25 = sor.u32 2097152, %s1902_s0 }
 0x8d7   :  { %vm390_vm12 = vcmp.eq.s32.totalorder %v387_v11, %v389_v15  ;;  %vm391_vm13 = vcmp.eq.s32.totalorder %v388_v14, %v389_v15 }
 0x8d8   :  { %v392_v17 = vsel %vm390_vm12, 1, %v1295_v16  ;;  %v393_v18 = vsel %vm391_vm13, 1, %v1295_v16 }
 0x8d9   :  { %v394_v19 = vsel %vm54_vm5, %v392_v17, 0  ;;  %v395_v20 = vsel %vm54_vm5, %v393_v18, 0 }
 0x8da   :  { %v396_v21 = vadd.s32 %v395_v20, %v394_v19 }
 0x8dc   :  { %v398_v22 = vshrl.u32 %v396_v21, 16  ;;  %v397_v23 = vand.u32 65535, %v396_v21 }
 0x8de   :  { %v400_v24 = vcvt.s32.f32 %v398_v22  ;;  %v399_v25 = vcvt.s32.f32 %v397_v23 }
 0x8e0   :  { %403 = vadd.xlane.f32.xlu0 %v400_v24  ;;  %401 = vadd.xlane.f32.xlu1 %v399_v25 }
 0x96d   :  { %v404_v26 = vpop.xlane.xlu0 %403  ;;  %v402_v27 = vpop.xlane.xlu1 %401 }
 0x96e   :  { %v406_v28 = vcvt.f32.s32 %v404_v26  ;;  %v405_v30 = vcvt.f32.s32 %v402_v27  ;;  %v489_v26 = vand.u32 4294705152, %v1330_v12  ;;  %v490_v27 = vand.u32 4294705152, %v1334_v13 }
 0x970   :  { %v407_v29 = vshll.u32 %v406_v28, 16 }
 0x972   :  { %v408_v31 = vadd.s32 %v407_v29, %v405_v30 }
 0x974   :  { %v409_v32 = vrot.slane %v408_v31, 4 }
 0x976   :  { %v410_v33 = vadd.s32 %v409_v32, %v408_v31 }
 0x978   :  { %v411_v34 = vrot.slane %v410_v33, 2 }
 0x97a   :  { %v412_v35 = vadd.s32 %v411_v34, %v410_v33 }
 0x97c   :  { %v413_v36 = vrot.slane %v412_v35, 1 }
 0x97e   :  { %v414_v37 = vadd.s32 %v413_v36, %v412_v35 }
 0x980   :  { %1191 = vpush %v414_v37 }
 0x9b1   :  { %s1192_s23 = spop %1191 }
 0x9b2   :  { %p416_p4 = scmp.ge.s32.totalorder %s1904_s22, %s1192_s23  ;;  %s419_s24 = ssub.s32 %s1904_s22, %s1192_s23 }
 0x9b4   :  { %s1906_s25 = smov (!%p416_p4, %s417_s25), %s1902_s0  ;;  %s1908_s24 = smov (!%p416_p4, %s419_s24), %s1904_s22 }
 0x9b5   :  { %v423_v40 = vstv %s1906_s25  ;;  %s451_s28 = sor.u32 1048576, %s1906_s25 }
 0x9b6   :  { %vm424_vm14 = vcmp.eq.s32.totalorder %v421_v38, %v423_v40  ;;  %vm425_vm15 = vcmp.eq.s32.totalorder %v422_v39, %v423_v40 }
 0x9b7   :  { %v426_v41 = vsel %vm424_vm14, 1, %v1295_v16  ;;  %v427_v42 = vsel %vm425_vm15, 1, %v1295_v16 }
 0x9b8   :  { %v428_v43 = vsel %vm54_vm5, %v426_v41, 0  ;;  %v429_v44 = vsel %vm54_vm5, %v427_v42, 0 }
 0x9b9   :  { %v430_v45 = vadd.s32 %v429_v44, %v428_v43 }
 0x9bb   :  { %v432_v46 = vshrl.u32 %v430_v45, 16  ;;  %v431_v47 = vand.u32 65535, %v430_v45 }
 0x9bd   :  { %v434_v48 = vcvt.s32.f32 %v432_v46  ;;  %v433_v49 = vcvt.s32.f32 %v431_v47 }
 0x9bf   :  { %437 = vadd.xlane.f32.xlu0 %v434_v48  ;;  %435 = vadd.xlane.f32.xlu1 %v433_v49 }
 0xa4c   :  { %v438_v50 = vpop.xlane.xlu0 %437  ;;  %v436_v51 = vpop.xlane.xlu1 %435 }
 0xa4d   :  { %v440_v52 = vcvt.f32.s32 %v438_v50  ;;  %v439_v54 = vcvt.f32.s32 %v436_v51  ;;  %v523_v50 = vand.u32 4294836224, %v1330_v12  ;;  %v524_v51 = vand.u32 4294836224, %v1334_v13 }
 0xa4f   :  { %v441_v53 = vshll.u32 %v440_v52, 16 }
 0xa51   :  { %v442_v55 = vadd.s32 %v441_v53, %v439_v54 }
 0xa53   :  { %v443_v56 = vrot.slane %v442_v55, 4 }
 0xa55   :  { %v444_v57 = vadd.s32 %v443_v56, %v442_v55 }
 0xa57   :  { %v445_v58 = vrot.slane %v444_v57, 2 }
 0xa59   :  { %v446_v59 = vadd.s32 %v445_v58, %v444_v57 }
 0xa5b   :  { %v447_v60 = vrot.slane %v446_v59, 1 }
 0xa5d   :  { %v448_v61 = vadd.s32 %v447_v60, %v446_v59 }
 0xa5f   :  { %1193 = vpush %v448_v61 }
 0xa90   :  { %s1194_s26 = spop %1193 }
 0xa91   :  { %p450_p5 = scmp.ge.s32.totalorder %s1908_s24, %s1194_s26  ;;  %s453_s27 = ssub.s32 %s1908_s24, %s1194_s26 }
 0xa93   :  { %s1910_s28 = smov (!%p450_p5, %s451_s28), %s1906_s25  ;;  %s1912_s27 = smov (!%p450_p5, %s453_s27), %s1908_s24 }
 0xa94   :  { %v457_v0 = vstv %s1910_s28  ;;  %s485_s3 = sor.u32 524288, %s1910_s28 }
 0xa95   :  { %vm458_vm0 = vcmp.eq.s32.totalorder %v455_v62, %v457_v0  ;;  %vm459_vm1 = vcmp.eq.s32.totalorder %v456_v63, %v457_v0 }
 0xa96   :  { %v460_v1 = vsel %vm458_vm0, 1, %v1295_v16  ;;  %v461_v2 = vsel %vm459_vm1, 1, %v1295_v16 }
 0xa97   :  { %v462_v3 = vsel %vm54_vm5, %v460_v1, 0  ;;  %v463_v4 = vsel %vm54_vm5, %v461_v2, 0 }
 0xa98   :  { %v464_v5 = vadd.s32 %v463_v4, %v462_v3 }
 0xa9a   :  { %v466_v6 = vshrl.u32 %v464_v5, 16  ;;  %v465_v8 = vand.u32 65535, %v464_v5 }
 0xa9c   :  { %v468_v9 = vcvt.s32.f32 %v466_v6  ;;  %v467_v10 = vcvt.s32.f32 %v465_v8 }
 0xa9e   :  { %471 = vadd.xlane.f32.xlu0 %v468_v9  ;;  %469 = vadd.xlane.f32.xlu1 %v467_v10 }
 0xb2b   :  { %v472_v11 = vpop.xlane.xlu0 %471  ;;  %v470_v14 = vpop.xlane.xlu1 %469 }
 0xb2c   :  { %v474_v15 = vcvt.f32.s32 %v472_v11  ;;  %v473_v18 = vcvt.f32.s32 %v470_v14  ;;  %v557_v11 = vand.u32 4294901760, %v1330_v12  ;;  %v558_v14 = vand.u32 4294901760, %v1334_v13 }
 0xb2e   :  { %v475_v17 = vshll.u32 %v474_v15, 16 }
 0xb30   :  { %v476_v19 = vadd.s32 %v475_v17, %v473_v18 }
 0xb32   :  { %v477_v20 = vrot.slane %v476_v19, 4 }
 0xb34   :  { %v478_v21 = vadd.s32 %v477_v20, %v476_v19 }
 0xb36   :  { %v479_v22 = vrot.slane %v478_v21, 2 }
 0xb38   :  { %v480_v23 = vadd.s32 %v479_v22, %v478_v21 }
 0xb3a   :  { %v481_v24 = vrot.slane %v480_v23, 1 }
 0xb3c   :  { %v482_v25 = vadd.s32 %v481_v24, %v480_v23 }
 0xb3e   :  { %1195 = vpush %v482_v25 }
 0xb6f   :  { %s1196_s29 = spop %1195 }
 0xb70   :  { %p484_p6 = scmp.ge.s32.totalorder %s1912_s27, %s1196_s29  ;;  %s487_s30 = ssub.s32 %s1912_s27, %s1196_s29 }
 0xb72   :  { %s1914_s3 = smov (!%p484_p6, %s485_s3), %s1910_s28  ;;  %s1916_s30 = smov (!%p484_p6, %s487_s30), %s1912_s27 }
 0xb73   :  { %v491_v28 = vstv %s1914_s3  ;;  %s519_s6 = sor.u32 262144, %s1914_s3 }
 0xb74   :  { %vm492_vm2 = vcmp.eq.s32.totalorder %v489_v26, %v491_v28  ;;  %vm493_vm3 = vcmp.eq.s32.totalorder %v490_v27, %v491_v28 }
 0xb75   :  { %v494_v29 = vsel %vm492_vm2, 1, %v1295_v16  ;;  %v495_v30 = vsel %vm493_vm3, 1, %v1295_v16 }
 0xb76   :  { %v496_v31 = vsel %vm54_vm5, %v494_v29, 0  ;;  %v497_v32 = vsel %vm54_vm5, %v495_v30, 0 }
 0xb77   :  { %v498_v33 = vadd.s32 %v497_v32, %v496_v31 }
 0xb79   :  { %v500_v34 = vshrl.u32 %v498_v33, 16  ;;  %v499_v35 = vand.u32 65535, %v498_v33 }
 0xb7b   :  { %v502_v36 = vcvt.s32.f32 %v500_v34  ;;  %v501_v37 = vcvt.s32.f32 %v499_v35 }
 0xb7d   :  { %505 = vadd.xlane.f32.xlu0 %v502_v36  ;;  %503 = vadd.xlane.f32.xlu1 %v501_v37 }
 0xc0a   :  { %v506_v38 = vpop.xlane.xlu0 %505  ;;  %v504_v39 = vpop.xlane.xlu1 %503 }
 0xc0b   :  { %v508_v40 = vcvt.f32.s32 %v506_v38  ;;  %v507_v42 = vcvt.f32.s32 %v504_v39  ;;  %v591_v38 = vand.u32 4294934528, %v1330_v12  ;;  %v592_v39 = vand.u32 4294934528, %v1334_v13 }
 0xc0d   :  { %v509_v41 = vshll.u32 %v508_v40, 16 }
 0xc0f   :  { %v510_v43 = vadd.s32 %v509_v41, %v507_v42 }
 0xc11   :  { %v511_v44 = vrot.slane %v510_v43, 4 }
 0xc13   :  { %v512_v45 = vadd.s32 %v511_v44, %v510_v43 }
 0xc15   :  { %v513_v46 = vrot.slane %v512_v45, 2 }
 0xc17   :  { %v514_v47 = vadd.s32 %v513_v46, %v512_v45 }
 0xc19   :  { %v515_v48 = vrot.slane %v514_v47, 1 }
 0xc1b   :  { %v516_v49 = vadd.s32 %v515_v48, %v514_v47 }
 0xc1d   :  { %1197 = vpush %v516_v49 }
 0xc4e   :  { %s1198_s4 = spop %1197 }
 0xc4f   :  { %p518_p7 = scmp.ge.s32.totalorder %s1916_s30, %s1198_s4  ;;  %s521_s5 = ssub.s32 %s1916_s30, %s1198_s4 }
 0xc51   :  { %s1918_s6 = smov (!%p518_p7, %s519_s6), %s1914_s3  ;;  %s1920_s5 = smov (!%p518_p7, %s521_s5), %s1916_s30 }
 0xc52   :  { %v525_v52 = vstv %s1918_s6  ;;  %s553_s9 = sor.u32 131072, %s1918_s6 }
 0xc53   :  { %vm526_vm6 = vcmp.eq.s32.totalorder %v523_v50, %v525_v52  ;;  %vm527_vm7 = vcmp.eq.s32.totalorder %v524_v51, %v525_v52 }
 0xc54   :  { %v528_v53 = vsel %vm526_vm6, 1, %v1295_v16  ;;  %v529_v54 = vsel %vm527_vm7, 1, %v1295_v16 }
 0xc55   :  { %v530_v55 = vsel %vm54_vm5, %v528_v53, 0  ;;  %v531_v56 = vsel %vm54_vm5, %v529_v54, 0 }
 0xc56   :  { %v532_v57 = vadd.s32 %v531_v56, %v530_v55 }
 0xc58   :  { %v534_v58 = vshrl.u32 %v532_v57, 16  ;;  %v533_v59 = vand.u32 65535, %v532_v57 }
 0xc5a   :  { %v536_v60 = vcvt.s32.f32 %v534_v58  ;;  %v535_v61 = vcvt.s32.f32 %v533_v59 }
 0xc5c   :  { %539 = vadd.xlane.f32.xlu0 %v536_v60  ;;  %537 = vadd.xlane.f32.xlu1 %v535_v61 }
 0xce9   :  { %v540_v62 = vpop.xlane.xlu0 %539  ;;  %v538_v63 = vpop.xlane.xlu1 %537 }
 0xcea   :  { %v542_v0 = vcvt.f32.s32 %v540_v62  ;;  %v541_v2 = vcvt.f32.s32 %v538_v63  ;;  %v625_v62 = vand.u32 4294950912, %v1330_v12  ;;  %v626_v63 = vand.u32 4294950912, %v1334_v13 }
 0xcec   :  { %v543_v1 = vshll.u32 %v542_v0, 16 }
 0xcee   :  { %v544_v3 = vadd.s32 %v543_v1, %v541_v2 }
 0xcf0   :  { %v545_v4 = vrot.slane %v544_v3, 4 }
 0xcf2   :  { %v546_v5 = vadd.s32 %v545_v4, %v544_v3 }
 0xcf4   :  { %v547_v6 = vrot.slane %v546_v5, 2 }
 0xcf6   :  { %v548_v8 = vadd.s32 %v547_v6, %v546_v5 }
 0xcf8   :  { %v549_v9 = vrot.slane %v548_v8, 1 }
 0xcfa   :  { %v550_v10 = vadd.s32 %v549_v9, %v548_v8 }
 0xcfc   :  { %1199 = vpush %v550_v10 }
 0xd2d   :  { %s1200_s7 = spop %1199 }
 0xd2e   :  { %p552_p8 = scmp.ge.s32.totalorder %s1920_s5, %s1200_s7  ;;  %s555_s8 = ssub.s32 %s1920_s5, %s1200_s7 }
 0xd30   :  { %s1922_s9 = smov (!%p552_p8, %s553_s9), %s1918_s6  ;;  %s1924_s8 = smov (!%p552_p8, %s555_s8), %s1920_s5 }
 0xd31   :  { %v559_v15 = vstv %s1922_s9  ;;  %s587_s12 = sor.u32 65536, %s1922_s9 }
 0xd32   :  { %vm560_vm8 = vcmp.eq.s32.totalorder %v557_v11, %v559_v15  ;;  %vm561_vm9 = vcmp.eq.s32.totalorder %v558_v14, %v559_v15 }
 0xd33   :  { %v562_v17 = vsel %vm560_vm8, 1, %v1295_v16  ;;  %v563_v18 = vsel %vm561_vm9, 1, %v1295_v16 }
 0xd34   :  { %v564_v19 = vsel %vm54_vm5, %v562_v17, 0  ;;  %v565_v20 = vsel %vm54_vm5, %v563_v18, 0 }
 0xd35   :  { %v566_v21 = vadd.s32 %v565_v20, %v564_v19 }
 0xd37   :  { %v568_v22 = vshrl.u32 %v566_v21, 16  ;;  %v567_v23 = vand.u32 65535, %v566_v21 }
 0xd39   :  { %v570_v24 = vcvt.s32.f32 %v568_v22  ;;  %v569_v25 = vcvt.s32.f32 %v567_v23 }
 0xd3b   :  { %573 = vadd.xlane.f32.xlu0 %v570_v24  ;;  %571 = vadd.xlane.f32.xlu1 %v569_v25 }
 0xdc8   :  { %v574_v26 = vpop.xlane.xlu0 %573  ;;  %v572_v27 = vpop.xlane.xlu1 %571 }
 0xdc9   :  { %v576_v28 = vcvt.f32.s32 %v574_v26  ;;  %v575_v30 = vcvt.f32.s32 %v572_v27  ;;  %v659_v26 = vand.u32 4294959104, %v1330_v12  ;;  %v660_v27 = vand.u32 4294959104, %v1334_v13 }
 0xdcb   :  { %v577_v29 = vshll.u32 %v576_v28, 16 }
 0xdcd   :  { %v578_v31 = vadd.s32 %v577_v29, %v575_v30 }
 0xdcf   :  { %v579_v32 = vrot.slane %v578_v31, 4 }
 0xdd1   :  { %v580_v33 = vadd.s32 %v579_v32, %v578_v31 }
 0xdd3   :  { %v581_v34 = vrot.slane %v580_v33, 2 }
 0xdd5   :  { %v582_v35 = vadd.s32 %v581_v34, %v580_v33 }
 0xdd7   :  { %v583_v36 = vrot.slane %v582_v35, 1 }
 0xdd9   :  { %v584_v37 = vadd.s32 %v583_v36, %v582_v35 }
 0xddb   :  { %1201 = vpush %v584_v37 }
 0xe0c   :  { %s1202_s10 = spop %1201 }
 0xe0d   :  { %p586_p9 = scmp.ge.s32.totalorder %s1924_s8, %s1202_s10  ;;  %s589_s11 = ssub.s32 %s1924_s8, %s1202_s10 }
 0xe0f   :  { %s1926_s12 = smov (!%p586_p9, %s587_s12), %s1922_s9  ;;  %s1928_s11 = smov (!%p586_p9, %s589_s11), %s1924_s8 }
 0xe10   :  { %v593_v40 = vstv %s1926_s12  ;;  %s621_s15 = sor.u32 32768, %s1926_s12 }
 0xe11   :  { %vm594_vm10 = vcmp.eq.s32.totalorder %v591_v38, %v593_v40  ;;  %vm595_vm11 = vcmp.eq.s32.totalorder %v592_v39, %v593_v40 }
 0xe12   :  { %v596_v41 = vsel %vm594_vm10, 1, %v1295_v16  ;;  %v597_v42 = vsel %vm595_vm11, 1, %v1295_v16 }
 0xe13   :  { %v598_v43 = vsel %vm54_vm5, %v596_v41, 0  ;;  %v599_v44 = vsel %vm54_vm5, %v597_v42, 0 }
 0xe14   :  { %v600_v45 = vadd.s32 %v599_v44, %v598_v43 }
 0xe16   :  { %v602_v46 = vshrl.u32 %v600_v45, 16  ;;  %v601_v47 = vand.u32 65535, %v600_v45 }
 0xe18   :  { %v604_v48 = vcvt.s32.f32 %v602_v46  ;;  %v603_v49 = vcvt.s32.f32 %v601_v47 }
 0xe1a   :  { %607 = vadd.xlane.f32.xlu0 %v604_v48  ;;  %605 = vadd.xlane.f32.xlu1 %v603_v49 }
 0xea7   :  { %v608_v50 = vpop.xlane.xlu0 %607  ;;  %v606_v51 = vpop.xlane.xlu1 %605 }
 0xea8   :  { %v610_v52 = vcvt.f32.s32 %v608_v50  ;;  %v609_v54 = vcvt.f32.s32 %v606_v51  ;;  %v693_v50 = vand.u32 4294963200, %v1330_v12  ;;  %v694_v51 = vand.u32 4294963200, %v1334_v13 }
 0xeaa   :  { %v611_v53 = vshll.u32 %v610_v52, 16 }
 0xeac   :  { %v612_v55 = vadd.s32 %v611_v53, %v609_v54 }
 0xeae   :  { %v613_v56 = vrot.slane %v612_v55, 4 }
 0xeb0   :  { %v614_v57 = vadd.s32 %v613_v56, %v612_v55 }
 0xeb2   :  { %v615_v58 = vrot.slane %v614_v57, 2 }
 0xeb4   :  { %v616_v59 = vadd.s32 %v615_v58, %v614_v57 }
 0xeb6   :  { %v617_v60 = vrot.slane %v616_v59, 1 }
 0xeb8   :  { %v618_v61 = vadd.s32 %v617_v60, %v616_v59 }
 0xeba   :  { %1203 = vpush %v618_v61 }
 0xeeb   :  { %s1204_s13 = spop %1203 }
 0xeec   :  { %p620_p10 = scmp.ge.s32.totalorder %s1928_s11, %s1204_s13  ;;  %s623_s14 = ssub.s32 %s1928_s11, %s1204_s13 }
 0xeee   :  { %s1930_s15 = smov (!%p620_p10, %s621_s15), %s1926_s12  ;;  %s1932_s14 = smov (!%p620_p10, %s623_s14), %s1928_s11 }
 0xeef   :  { %v627_v0 = vstv %s1930_s15  ;;  %s655_s18 = sor.u32 16384, %s1930_s15 }
 0xef0   :  { %vm628_vm12 = vcmp.eq.s32.totalorder %v625_v62, %v627_v0  ;;  %vm629_vm13 = vcmp.eq.s32.totalorder %v626_v63, %v627_v0 }
 0xef1   :  { %v630_v1 = vsel %vm628_vm12, 1, %v1295_v16  ;;  %v631_v2 = vsel %vm629_vm13, 1, %v1295_v16 }
 0xef2   :  { %v632_v3 = vsel %vm54_vm5, %v630_v1, 0  ;;  %v633_v4 = vsel %vm54_vm5, %v631_v2, 0 }
 0xef3   :  { %v634_v5 = vadd.s32 %v633_v4, %v632_v3 }
 0xef5   :  { %v636_v6 = vshrl.u32 %v634_v5, 16  ;;  %v635_v8 = vand.u32 65535, %v634_v5 }
 0xef7   :  { %v638_v9 = vcvt.s32.f32 %v636_v6  ;;  %v637_v10 = vcvt.s32.f32 %v635_v8 }
 0xef9   :  { %641 = vadd.xlane.f32.xlu0 %v638_v9  ;;  %639 = vadd.xlane.f32.xlu1 %v637_v10 }
 0xf86   :  { %v642_v11 = vpop.xlane.xlu0 %641  ;;  %v640_v14 = vpop.xlane.xlu1 %639 }
 0xf87   :  { %v644_v15 = vcvt.f32.s32 %v642_v11  ;;  %v643_v18 = vcvt.f32.s32 %v640_v14  ;;  %v727_v11 = vand.u32 4294965248, %v1330_v12  ;;  %v728_v14 = vand.u32 4294965248, %v1334_v13 }
 0xf89   :  { %v645_v17 = vshll.u32 %v644_v15, 16 }
 0xf8b   :  { %v646_v19 = vadd.s32 %v645_v17, %v643_v18 }
 0xf8d   :  { %v647_v20 = vrot.slane %v646_v19, 4 }
 0xf8f   :  { %v648_v21 = vadd.s32 %v647_v20, %v646_v19 }
 0xf91   :  { %v649_v22 = vrot.slane %v648_v21, 2 }
 0xf93   :  { %v650_v23 = vadd.s32 %v649_v22, %v648_v21 }
 0xf95   :  { %v651_v24 = vrot.slane %v650_v23, 1 }
 0xf97   :  { %v652_v25 = vadd.s32 %v651_v24, %v650_v23 }
 0xf99   :  { %1205 = vpush %v652_v25 }
 0xfca   :  { %s1206_s16 = spop %1205 }
 0xfcb   :  { %p654_p11 = scmp.ge.s32.totalorder %s1932_s14, %s1206_s16  ;;  %s657_s17 = ssub.s32 %s1932_s14, %s1206_s16 }
 0xfcd   :  { %s1934_s18 = smov (!%p654_p11, %s655_s18), %s1930_s15  ;;  %s1936_s17 = smov (!%p654_p11, %s657_s17), %s1932_s14 }
 0xfce   :  { %v661_v28 = vstv %s1934_s18  ;;  %s689_s21 = sor.u32 8192, %s1934_s18 }
 0xfcf   :  { %vm662_vm14 = vcmp.eq.s32.totalorder %v659_v26, %v661_v28  ;;  %vm663_vm15 = vcmp.eq.s32.totalorder %v660_v27, %v661_v28 }
 0xfd0   :  { %v664_v29 = vsel %vm662_vm14, 1, %v1295_v16  ;;  %v665_v30 = vsel %vm663_vm15, 1, %v1295_v16 }
 0xfd1   :  { %v666_v31 = vsel %vm54_vm5, %v664_v29, 0  ;;  %v667_v32 = vsel %vm54_vm5, %v665_v30, 0 }
 0xfd2   :  { %v668_v33 = vadd.s32 %v667_v32, %v666_v31 }
 0xfd4   :  { %v670_v34 = vshrl.u32 %v668_v33, 16  ;;  %v669_v35 = vand.u32 65535, %v668_v33 }
 0xfd6   :  { %v672_v36 = vcvt.s32.f32 %v670_v34  ;;  %v671_v37 = vcvt.s32.f32 %v669_v35 }
 0xfd8   :  { %675 = vadd.xlane.f32.xlu0 %v672_v36  ;;  %673 = vadd.xlane.f32.xlu1 %v671_v37 }
0x1065   :  { %v676_v38 = vpop.xlane.xlu0 %675  ;;  %v674_v39 = vpop.xlane.xlu1 %673 }
0x1066   :  { %v678_v40 = vcvt.f32.s32 %v676_v38  ;;  %v677_v42 = vcvt.f32.s32 %v674_v39  ;;  %v761_v38 = vand.u32 4294966272, %v1330_v12  ;;  %v762_v39 = vand.u32 4294966272, %v1334_v13 }
0x1068   :  { %v679_v41 = vshll.u32 %v678_v40, 16 }
0x106a   :  { %v680_v43 = vadd.s32 %v679_v41, %v677_v42 }
0x106c   :  { %v681_v44 = vrot.slane %v680_v43, 4 }
0x106e   :  { %v682_v45 = vadd.s32 %v681_v44, %v680_v43 }
0x1070   :  { %v683_v46 = vrot.slane %v682_v45, 2 }
0x1072   :  { %v684_v47 = vadd.s32 %v683_v46, %v682_v45 }
0x1074   :  { %v685_v48 = vrot.slane %v684_v47, 1 }
0x1076   :  { %v686_v49 = vadd.s32 %v685_v48, %v684_v47 }
0x1078   :  { %1207 = vpush %v686_v49 }
0x10a9   :  { %s1208_s19 = spop %1207 }
0x10aa   :  { %p688_p12 = scmp.ge.s32.totalorder %s1936_s17, %s1208_s19  ;;  %s691_s20 = ssub.s32 %s1936_s17, %s1208_s19 }
0x10ac   :  { %s1938_s21 = smov (!%p688_p12, %s689_s21), %s1934_s18  ;;  %s1940_s20 = smov (!%p688_p12, %s691_s20), %s1936_s17 }
0x10ad   :  { %v695_v52 = vstv %s1938_s21  ;;  %s723_s23 = sor.u32 4096, %s1938_s21 }
0x10ae   :  { %vm696_vm0 = vcmp.eq.s32.totalorder %v693_v50, %v695_v52  ;;  %vm697_vm1 = vcmp.eq.s32.totalorder %v694_v51, %v695_v52 }
0x10af   :  { %v698_v53 = vsel %vm696_vm0, 1, %v1295_v16  ;;  %v699_v54 = vsel %vm697_vm1, 1, %v1295_v16 }
0x10b0   :  { %v700_v55 = vsel %vm54_vm5, %v698_v53, 0  ;;  %v701_v56 = vsel %vm54_vm5, %v699_v54, 0 }
0x10b1   :  { %v702_v57 = vadd.s32 %v701_v56, %v700_v55 }
0x10b3   :  { %v704_v58 = vshrl.u32 %v702_v57, 16  ;;  %v703_v59 = vand.u32 65535, %v702_v57 }
0x10b5   :  { %v706_v60 = vcvt.s32.f32 %v704_v58  ;;  %v705_v61 = vcvt.s32.f32 %v703_v59 }
0x10b7   :  { %709 = vadd.xlane.f32.xlu0 %v706_v60  ;;  %707 = vadd.xlane.f32.xlu1 %v705_v61 }
0x1144   :  { %v710_v62 = vpop.xlane.xlu0 %709  ;;  %v708_v63 = vpop.xlane.xlu1 %707 }
0x1145   :  { %v712_v0 = vcvt.f32.s32 %v710_v62  ;;  %v711_v2 = vcvt.f32.s32 %v708_v63  ;;  %v795_v62 = vand.u32 4294966784, %v1330_v12  ;;  %v796_v63 = vand.u32 4294966784, %v1334_v13 }
0x1147   :  { %v713_v1 = vshll.u32 %v712_v0, 16 }
0x1149   :  { %v714_v3 = vadd.s32 %v713_v1, %v711_v2 }
0x114b   :  { %v715_v4 = vrot.slane %v714_v3, 4 }
0x114d   :  { %v716_v5 = vadd.s32 %v715_v4, %v714_v3 }
0x114f   :  { %v717_v6 = vrot.slane %v716_v5, 2 }
0x1151   :  { %v718_v8 = vadd.s32 %v717_v6, %v716_v5 }
0x1153   :  { %v719_v9 = vrot.slane %v718_v8, 1 }
0x1155   :  { %v720_v10 = vadd.s32 %v719_v9, %v718_v8 }
0x1157   :  { %1209 = vpush %v720_v10 }
0x1188   :  { %s1210_s22 = spop %1209 }
0x1189   :  { %p722_p13 = scmp.ge.s32.totalorder %s1940_s20, %s1210_s22  ;;  %s725_s0 = ssub.s32 %s1940_s20, %s1210_s22 }
0x118b   :  { %s1942_s23 = smov (!%p722_p13, %s723_s23), %s1938_s21  ;;  %s1944_s0 = smov (!%p722_p13, %s725_s0), %s1940_s20 }
0x118c   :  { %v729_v15 = vstv %s1942_s23  ;;  %s757_s26 = sor.u32 2048, %s1942_s23 }
0x118d   :  { %vm730_vm2 = vcmp.eq.s32.totalorder %v727_v11, %v729_v15  ;;  %vm731_vm3 = vcmp.eq.s32.totalorder %v728_v14, %v729_v15 }
0x118e   :  { %v732_v17 = vsel %vm730_vm2, 1, %v1295_v16  ;;  %v733_v18 = vsel %vm731_vm3, 1, %v1295_v16 }
0x118f   :  { %v734_v19 = vsel %vm54_vm5, %v732_v17, 0  ;;  %v735_v20 = vsel %vm54_vm5, %v733_v18, 0 }
0x1190   :  { %v736_v21 = vadd.s32 %v735_v20, %v734_v19 }
0x1192   :  { %v738_v22 = vshrl.u32 %v736_v21, 16  ;;  %v737_v23 = vand.u32 65535, %v736_v21 }
0x1194   :  { %v740_v24 = vcvt.s32.f32 %v738_v22  ;;  %v739_v25 = vcvt.s32.f32 %v737_v23 }
0x1196   :  { %743 = vadd.xlane.f32.xlu0 %v740_v24  ;;  %741 = vadd.xlane.f32.xlu1 %v739_v25 }
0x1223   :  { %v744_v26 = vpop.xlane.xlu0 %743  ;;  %v742_v27 = vpop.xlane.xlu1 %741 }
0x1224   :  { %v746_v28 = vcvt.f32.s32 %v744_v26  ;;  %v745_v30 = vcvt.f32.s32 %v742_v27  ;;  %v829_v26 = vand.u32 4294967040, %v1330_v12  ;;  %v830_v27 = vand.u32 4294967040, %v1334_v13 }
0x1226   :  { %v747_v29 = vshll.u32 %v746_v28, 16 }
0x1228   :  { %v748_v31 = vadd.s32 %v747_v29, %v745_v30 }
0x122a   :  { %v749_v32 = vrot.slane %v748_v31, 4 }
0x122c   :  { %v750_v33 = vadd.s32 %v749_v32, %v748_v31 }
0x122e   :  { %v751_v34 = vrot.slane %v750_v33, 2 }
0x1230   :  { %v752_v35 = vadd.s32 %v751_v34, %v750_v33 }
0x1232   :  { %v753_v36 = vrot.slane %v752_v35, 1 }
0x1234   :  { %v754_v37 = vadd.s32 %v753_v36, %v752_v35 }
0x1236   :  { %1211 = vpush %v754_v37 }
0x1267   :  { %s1212_s24 = spop %1211 }
0x1268   :  { %p756_p0 = scmp.ge.s32.totalorder %s1944_s0, %s1212_s24  ;;  %s759_s25 = ssub.s32 %s1944_s0, %s1212_s24 }
0x126a   :  { %s1946_s26 = smov (!%p756_p0, %s757_s26), %s1942_s23  ;;  %s1948_s25 = smov (!%p756_p0, %s759_s25), %s1944_s0 }
0x126b   :  { %v763_v40 = vstv %s1946_s26  ;;  %s791_s29 = sor.u32 1024, %s1946_s26 }
0x126c   :  { %vm764_vm6 = vcmp.eq.s32.totalorder %v761_v38, %v763_v40  ;;  %vm765_vm7 = vcmp.eq.s32.totalorder %v762_v39, %v763_v40 }
0x126d   :  { %v766_v41 = vsel %vm764_vm6, 1, %v1295_v16  ;;  %v767_v42 = vsel %vm765_vm7, 1, %v1295_v16 }
0x126e   :  { %v768_v43 = vsel %vm54_vm5, %v766_v41, 0  ;;  %v769_v44 = vsel %vm54_vm5, %v767_v42, 0 }
0x126f   :  { %v770_v45 = vadd.s32 %v769_v44, %v768_v43 }
0x1271   :  { %v772_v46 = vshrl.u32 %v770_v45, 16  ;;  %v771_v47 = vand.u32 65535, %v770_v45 }
0x1273   :  { %v774_v48 = vcvt.s32.f32 %v772_v46  ;;  %v773_v49 = vcvt.s32.f32 %v771_v47 }
0x1275   :  { %777 = vadd.xlane.f32.xlu0 %v774_v48  ;;  %775 = vadd.xlane.f32.xlu1 %v773_v49 }
0x1302   :  { %v778_v50 = vpop.xlane.xlu0 %777  ;;  %v776_v51 = vpop.xlane.xlu1 %775 }
0x1303   :  { %v780_v52 = vcvt.f32.s32 %v778_v50  ;;  %v779_v54 = vcvt.f32.s32 %v776_v51  ;;  %v863_v50 = vand.u32 4294967168, %v1330_v12  ;;  %v864_v51 = vand.u32 4294967168, %v1334_v13 }
0x1305   :  { %v781_v53 = vshll.u32 %v780_v52, 16 }
0x1307   :  { %v782_v55 = vadd.s32 %v781_v53, %v779_v54 }
0x1309   :  { %v783_v56 = vrot.slane %v782_v55, 4 }
0x130b   :  { %v784_v57 = vadd.s32 %v783_v56, %v782_v55 }
0x130d   :  { %v785_v58 = vrot.slane %v784_v57, 2 }
0x130f   :  { %v786_v59 = vadd.s32 %v785_v58, %v784_v57 }
0x1311   :  { %v787_v60 = vrot.slane %v786_v59, 1 }
0x1313   :  { %v788_v61 = vadd.s32 %v787_v60, %v786_v59 }
0x1315   :  { %1213 = vpush %v788_v61 }
0x1346   :  { %s1214_s27 = spop %1213 }
0x1347   :  { %p790_p1 = scmp.ge.s32.totalorder %s1948_s25, %s1214_s27  ;;  %s793_s28 = ssub.s32 %s1948_s25, %s1214_s27 }
0x1349   :  { %s1950_s29 = smov (!%p790_p1, %s791_s29), %s1946_s26  ;;  %s1952_s28 = smov (!%p790_p1, %s793_s28), %s1948_s25 }
0x134a   :  { %v797_v0 = vstv %s1950_s29  ;;  %s825_s4 = sor.u32 512, %s1950_s29 }
0x134b   :  { %vm798_vm8 = vcmp.eq.s32.totalorder %v795_v62, %v797_v0  ;;  %vm799_vm9 = vcmp.eq.s32.totalorder %v796_v63, %v797_v0 }
0x134c   :  { %v800_v1 = vsel %vm798_vm8, 1, %v1295_v16  ;;  %v801_v2 = vsel %vm799_vm9, 1, %v1295_v16 }
0x134d   :  { %v802_v3 = vsel %vm54_vm5, %v800_v1, 0  ;;  %v803_v4 = vsel %vm54_vm5, %v801_v2, 0 }
0x134e   :  { %v804_v5 = vadd.s32 %v803_v4, %v802_v3 }
0x1350   :  { %v806_v6 = vshrl.u32 %v804_v5, 16  ;;  %v805_v8 = vand.u32 65535, %v804_v5 }
0x1352   :  { %v808_v9 = vcvt.s32.f32 %v806_v6  ;;  %v807_v10 = vcvt.s32.f32 %v805_v8 }
0x1354   :  { %811 = vadd.xlane.f32.xlu0 %v808_v9  ;;  %809 = vadd.xlane.f32.xlu1 %v807_v10 }
0x13e1   :  { %v812_v11 = vpop.xlane.xlu0 %811  ;;  %v810_v14 = vpop.xlane.xlu1 %809 }
0x13e2   :  { %v814_v15 = vcvt.f32.s32 %v812_v11  ;;  %v813_v18 = vcvt.f32.s32 %v810_v14  ;;  %v897_v11 = vand.u32 4294967232, %v1330_v12  ;;  %v898_v14 = vand.u32 4294967232, %v1334_v13 }
0x13e4   :  { %v815_v17 = vshll.u32 %v814_v15, 16 }
0x13e6   :  { %v816_v19 = vadd.s32 %v815_v17, %v813_v18 }
0x13e8   :  { %v817_v20 = vrot.slane %v816_v19, 4 }
0x13ea   :  { %v818_v21 = vadd.s32 %v817_v20, %v816_v19 }
0x13ec   :  { %v819_v22 = vrot.slane %v818_v21, 2 }
0x13ee   :  { %v820_v23 = vadd.s32 %v819_v22, %v818_v21 }
0x13f0   :  { %v821_v24 = vrot.slane %v820_v23, 1 }
0x13f2   :  { %v822_v25 = vadd.s32 %v821_v24, %v820_v23 }
0x13f4   :  { %1215 = vpush %v822_v25 }
0x1425   :  { %s1216_s30 = spop %1215 }
0x1426   :  { %p824_p2 = scmp.ge.s32.totalorder %s1952_s28, %s1216_s30  ;;  %s827_s3 = ssub.s32 %s1952_s28, %s1216_s30 }
0x1428   :  { %s1954_s4 = smov (!%p824_p2, %s825_s4), %s1950_s29  ;;  %s1956_s3 = smov (!%p824_p2, %s827_s3), %s1952_s28 }
0x1429   :  { %v831_v28 = vstv %s1954_s4  ;;  %s859_s7 = sor.u32 256, %s1954_s4 }
0x142a   :  { %vm832_vm10 = vcmp.eq.s32.totalorder %v829_v26, %v831_v28  ;;  %vm833_vm11 = vcmp.eq.s32.totalorder %v830_v27, %v831_v28 }
0x142b   :  { %v834_v29 = vsel %vm832_vm10, 1, %v1295_v16  ;;  %v835_v30 = vsel %vm833_vm11, 1, %v1295_v16 }
0x142c   :  { %v836_v31 = vsel %vm54_vm5, %v834_v29, 0  ;;  %v837_v32 = vsel %vm54_vm5, %v835_v30, 0 }
0x142d   :  { %v838_v33 = vadd.s32 %v837_v32, %v836_v31 }
0x142f   :  { %v840_v34 = vshrl.u32 %v838_v33, 16  ;;  %v839_v35 = vand.u32 65535, %v838_v33 }
0x1431   :  { %v842_v36 = vcvt.s32.f32 %v840_v34  ;;  %v841_v37 = vcvt.s32.f32 %v839_v35 }
0x1433   :  { %845 = vadd.xlane.f32.xlu0 %v842_v36  ;;  %843 = vadd.xlane.f32.xlu1 %v841_v37 }
0x14c0   :  { %v846_v38 = vpop.xlane.xlu0 %845  ;;  %v844_v39 = vpop.xlane.xlu1 %843 }
0x14c1   :  { %v848_v40 = vcvt.f32.s32 %v846_v38  ;;  %v847_v42 = vcvt.f32.s32 %v844_v39  ;;  %v931_v38 = vand.u32 4294967264, %v1330_v12  ;;  %v932_v39 = vand.u32 4294967264, %v1334_v13 }
0x14c3   :  { %v849_v41 = vshll.u32 %v848_v40, 16 }
0x14c5   :  { %v850_v43 = vadd.s32 %v849_v41, %v847_v42 }
0x14c7   :  { %v851_v44 = vrot.slane %v850_v43, 4 }
0x14c9   :  { %v852_v45 = vadd.s32 %v851_v44, %v850_v43 }
0x14cb   :  { %v853_v46 = vrot.slane %v852_v45, 2 }
0x14cd   :  { %v854_v47 = vadd.s32 %v853_v46, %v852_v45 }
0x14cf   :  { %v855_v48 = vrot.slane %v854_v47, 1 }
0x14d1   :  { %v856_v49 = vadd.s32 %v855_v48, %v854_v47 }
0x14d3   :  { %1217 = vpush %v856_v49 }
0x1504   :  { %s1218_s5 = spop %1217 }
0x1505   :  { %p858_p3 = scmp.ge.s32.totalorder %s1956_s3, %s1218_s5  ;;  %s861_s6 = ssub.s32 %s1956_s3, %s1218_s5 }
0x1507   :  { %s1958_s7 = smov (!%p858_p3, %s859_s7), %s1954_s4  ;;  %s1960_s6 = smov (!%p858_p3, %s861_s6), %s1956_s3 }
0x1508   :  { %v865_v52 = vstv %s1958_s7  ;;  %s893_s10 = sor.u32 128, %s1958_s7  ;;  %s1296_s3 = smov [#allocation6]  }
0x1509   :  { %vm866_vm12 = vcmp.eq.s32.totalorder %v863_v50, %v865_v52  ;;  %vm867_vm13 = vcmp.eq.s32.totalorder %v864_v51, %v865_v52  ;;  %s1162_s4 = sshll.u32 %s1296_s3, 4  ;;  %s1163_s4 = int_to_ptr.vmem [resolvable:$true] %s1162_s4 }
0x150a   :  { %v868_v53 = vsel %vm866_vm12, 1, %v1295_v16  ;;  %v869_v54 = vsel %vm867_vm13, 1, %v1295_v16  ;;  %p1271_p13 = scmp.lt.s32.totalorder %s1163_s4, %s1163_s4 }
0x150b   :  { %v870_v55 = vsel %vm54_vm5, %v868_v53, 0  ;;  %v871_v56 = vsel %vm54_vm5, %v869_v54, 0 }
0x150c   :  { %v872_v57 = vadd.s32 %v871_v56, %v870_v55 }
0x150e   :  { %v874_v58 = vshrl.u32 %v872_v57, 16  ;;  %v873_v59 = vand.u32 65535, %v872_v57 }
0x1510   :  { %v876_v60 = vcvt.s32.f32 %v874_v58  ;;  %v875_v61 = vcvt.s32.f32 %v873_v59 }
0x1512   :  { %879 = vadd.xlane.f32.xlu0 %v876_v60  ;;  %877 = vadd.xlane.f32.xlu1 %v875_v61 }
0x159f   :  { %v880_v62 = vpop.xlane.xlu0 %879  ;;  %v878_v63 = vpop.xlane.xlu1 %877 }
0x15a0   :  { %v882_v0 = vcvt.f32.s32 %v880_v62  ;;  %v881_v2 = vcvt.f32.s32 %v878_v63  ;;  %v965_v62 = vand.u32 4294967280, %v1330_v12  ;;  %v966_v63 = vand.u32 4294967280, %v1334_v13 }
0x15a2   :  { %v883_v1 = vshll.u32 %v882_v0, 16 }
0x15a4   :  { %v884_v3 = vadd.s32 %v883_v1, %v881_v2 }
0x15a6   :  { %v885_v4 = vrot.slane %v884_v3, 4 }
0x15a8   :  { %v886_v5 = vadd.s32 %v885_v4, %v884_v3 }
0x15aa   :  { %v887_v6 = vrot.slane %v886_v5, 2 }
0x15ac   :  { %v888_v8 = vadd.s32 %v887_v6, %v886_v5 }
0x15ae   :  { %v889_v9 = vrot.slane %v888_v8, 1 }
0x15b0   :  { %v890_v10 = vadd.s32 %v889_v9, %v888_v8 }
0x15b2   :  { %1219 = vpush %v890_v10 }
0x15e3   :  { %s1220_s8 = spop %1219 }
0x15e4   :  { %p892_p4 = scmp.ge.s32.totalorder %s1960_s6, %s1220_s8  ;;  %s895_s9 = ssub.s32 %s1960_s6, %s1220_s8 }
0x15e6   :  { %s1962_s10 = smov (!%p892_p4, %s893_s10), %s1958_s7  ;;  %s1964_s9 = smov (!%p892_p4, %s895_s9), %s1960_s6 }
0x15e7   :  { %v899_v15 = vstv %s1962_s10  ;;  %s927_s13 = sor.u32 64, %s1962_s10 }
0x15e8   :  { %vm900_vm14 = vcmp.eq.s32.totalorder %v897_v11, %v899_v15  ;;  %vm901_vm15 = vcmp.eq.s32.totalorder %v898_v14, %v899_v15 }
0x15e9   :  { %v902_v17 = vsel %vm900_vm14, 1, %v1295_v16  ;;  %v903_v18 = vsel %vm901_vm15, 1, %v1295_v16 }
0x15ea   :  { %v904_v19 = vsel %vm54_vm5, %v902_v17, 0  ;;  %v905_v20 = vsel %vm54_vm5, %v903_v18, 0 }
0x15eb   :  { %v906_v21 = vadd.s32 %v905_v20, %v904_v19 }
0x15ed   :  { %v908_v22 = vshrl.u32 %v906_v21, 16  ;;  %v907_v23 = vand.u32 65535, %v906_v21 }
0x15ef   :  { %v910_v24 = vcvt.s32.f32 %v908_v22  ;;  %v909_v25 = vcvt.s32.f32 %v907_v23 }
0x15f1   :  { %913 = vadd.xlane.f32.xlu0 %v910_v24  ;;  %911 = vadd.xlane.f32.xlu1 %v909_v25 }
0x167e   :  { %v914_v26 = vpop.xlane.xlu0 %913  ;;  %v912_v27 = vpop.xlane.xlu1 %911 }
0x167f   :  { %v916_v28 = vcvt.f32.s32 %v914_v26  ;;  %v915_v30 = vcvt.f32.s32 %v912_v27  ;;  %v999_v26 = vand.u32 4294967288, %v1330_v12  ;;  %v1000_v27 = vand.u32 4294967288, %v1334_v13 }
0x1681   :  { %v917_v29 = vshll.u32 %v916_v28, 16 }
0x1683   :  { %v918_v31 = vadd.s32 %v917_v29, %v915_v30 }
0x1685   :  { %v919_v32 = vrot.slane %v918_v31, 4 }
0x1687   :  { %v920_v33 = vadd.s32 %v919_v32, %v918_v31 }
0x1689   :  { %v921_v34 = vrot.slane %v920_v33, 2 }
0x168b   :  { %v922_v35 = vadd.s32 %v921_v34, %v920_v33 }
0x168d   :  { %v923_v36 = vrot.slane %v922_v35, 1 }
0x168f   :  { %v924_v37 = vadd.s32 %v923_v36, %v922_v35 }
0x1691   :  { %1221 = vpush %v924_v37 }
0x16c2   :  { %s1222_s11 = spop %1221 }
0x16c3   :  { %p926_p5 = scmp.ge.s32.totalorder %s1964_s9, %s1222_s11  ;;  %s929_s12 = ssub.s32 %s1964_s9, %s1222_s11 }
0x16c5   :  { %s1966_s13 = smov (!%p926_p5, %s927_s13), %s1962_s10  ;;  %s1968_s12 = smov (!%p926_p5, %s929_s12), %s1964_s9 }
0x16c6   :  { %v933_v40 = vstv %s1966_s13  ;;  %s961_s16 = sor.u32 32, %s1966_s13  ;;  %s1266_s9 = scalar_lea.vmem %s1163_s4, 16 }
0x16c7   :  { %vm934_vm0 = vcmp.eq.s32.totalorder %v931_v38, %v933_v40  ;;  %vm935_vm1 = vcmp.eq.s32.totalorder %v932_v39, %v933_v40  ;;  %p1267_p12 = scmp.ne.s32.totalorder %s1163_s4, %s1266_s9  ;;  %s1270_s10 = scalar_lea.vmem %s1163_s4, 32 }
0x16c8   :  { %v936_v41 = vsel %vm934_vm0, 1, %v1295_v16  ;;  %v937_v42 = vsel %vm935_vm1, 1, %v1295_v16  ;;  %p1272_p0 = scmp.lt.s32.totalorder %s1270_s10, %s1266_s9 }
0x16c9   :  { %v938_v43 = vsel %vm54_vm5, %v936_v41, 0  ;;  %v939_v44 = vsel %vm54_vm5, %v937_v42, 0 }
0x16ca   :  { %v940_v45 = vadd.s32 %v939_v44, %v938_v43  ;;  %p1273_p1 = por %p1272_p0, %p1271_p13 }
0x16cc   :  { %v942_v46 = vshrl.u32 %v940_v45, 16  ;;  %v941_v47 = vand.u32 65535, %v940_v45  ;;  %p1274_p2 = pnand %p1273_p1, %p1267_p12 }
0x16ce   :  { %v944_v48 = vcvt.s32.f32 %v942_v46  ;;  %v943_v49 = vcvt.s32.f32 %v941_v47 }
0x16d0   :  { %947 = vadd.xlane.f32.xlu0 %v944_v48  ;;  %945 = vadd.xlane.f32.xlu1 %v943_v49 }
0x175d   :  { %v948_v50 = vpop.xlane.xlu0 %947  ;;  %v946_v51 = vpop.xlane.xlu1 %945 }
0x175e   :  { %v950_v52 = vcvt.f32.s32 %v948_v50  ;;  %v949_v54 = vcvt.f32.s32 %v946_v51  ;;  %v1033_v50 = vand.u32 4294967292, %v1330_v12  ;;  %v1034_v51 = vand.u32 4294967292, %v1334_v13 }
0x1760   :  { %v951_v53 = vshll.u32 %v950_v52, 16 }
0x1762   :  { %v952_v55 = vadd.s32 %v951_v53, %v949_v54 }
0x1764   :  { %v953_v56 = vrot.slane %v952_v55, 4 }
0x1766   :  { %v954_v57 = vadd.s32 %v953_v56, %v952_v55 }
0x1768   :  { %v955_v58 = vrot.slane %v954_v57, 2 }
0x176a   :  { %v956_v59 = vadd.s32 %v955_v58, %v954_v57 }
0x176c   :  { %v957_v60 = vrot.slane %v956_v59, 1 }
0x176e   :  { %v958_v61 = vadd.s32 %v957_v60, %v956_v59 }
0x1770   :  { %1223 = vpush %v958_v61 }
0x17a1   :  { %s1224_s14 = spop %1223 }
0x17a2   :  { %p960_p6 = scmp.ge.s32.totalorder %s1968_s12, %s1224_s14  ;;  %s963_s15 = ssub.s32 %s1968_s12, %s1224_s14 }
0x17a4   :  { %s1970_s16 = smov (!%p960_p6, %s961_s16), %s1966_s13  ;;  %s1972_s15 = smov (!%p960_p6, %s963_s15), %s1968_s12 }
0x17a5   :  { %v967_v0 = vstv %s1970_s16  ;;  %s995_s19 = sor.u32 16, %s1970_s16 }
0x17a6   :  { %vm968_vm2 = vcmp.eq.s32.totalorder %v965_v62, %v967_v0  ;;  %vm969_vm3 = vcmp.eq.s32.totalorder %v966_v63, %v967_v0 }
0x17a7   :  { %v970_v1 = vsel %vm968_vm2, 1, %v1295_v16  ;;  %v971_v2 = vsel %vm969_vm3, 1, %v1295_v16 }
0x17a8   :  { %v972_v3 = vsel %vm54_vm5, %v970_v1, 0  ;;  %v973_v4 = vsel %vm54_vm5, %v971_v2, 0 }
0x17a9   :  { %v974_v5 = vadd.s32 %v973_v4, %v972_v3 }
0x17ab   :  { %v976_v6 = vshrl.u32 %v974_v5, 16  ;;  %v975_v8 = vand.u32 65535, %v974_v5 }
0x17ad   :  { %v978_v9 = vcvt.s32.f32 %v976_v6  ;;  %v977_v10 = vcvt.s32.f32 %v975_v8 }
0x17af   :  { %981 = vadd.xlane.f32.xlu0 %v978_v9  ;;  %979 = vadd.xlane.f32.xlu1 %v977_v10 }
0x183c   :  { %v982_v11 = vpop.xlane.xlu0 %981  ;;  %v980_v14 = vpop.xlane.xlu1 %979 }
0x183d   :  { %v984_v15 = vcvt.f32.s32 %v982_v11  ;;  %v983_v18 = vcvt.f32.s32 %v980_v14  ;;  %v1067_v11 = vand.u32 4294967294, %v1330_v12  ;;  %v1068_v14 = vand.u32 4294967294, %v1334_v13 }
0x183f   :  { %v985_v17 = vshll.u32 %v984_v15, 16 }
0x1841   :  { %v986_v19 = vadd.s32 %v985_v17, %v983_v18 }
0x1843   :  { %v987_v20 = vrot.slane %v986_v19, 4 }
0x1845   :  { %v988_v21 = vadd.s32 %v987_v20, %v986_v19 }
0x1847   :  { %v989_v22 = vrot.slane %v988_v21, 2 }
0x1849   :  { %v990_v23 = vadd.s32 %v989_v22, %v988_v21 }
0x184b   :  { %v991_v24 = vrot.slane %v990_v23, 1 }
0x184d   :  { %v992_v25 = vadd.s32 %v991_v24, %v990_v23 }
0x184f   :  { %1225 = vpush %v992_v25 }
0x1880   :  { %s1226_s17 = spop %1225 }
0x1881   :  { %p994_p7 = scmp.ge.s32.totalorder %s1972_s15, %s1226_s17  ;;  %s997_s18 = ssub.s32 %s1972_s15, %s1226_s17 }
0x1883   :  { %s1974_s19 = smov (!%p994_p7, %s995_s19), %s1970_s16  ;;  %s1976_s18 = smov (!%p994_p7, %s997_s18), %s1972_s15 }
0x1884   :  { %v1001_v28 = vstv %s1974_s19  ;;  %s1029_s22 = sor.u32 8, %s1974_s19 }
0x1885   :  { %vm1002_vm6 = vcmp.eq.s32.totalorder %v999_v26, %v1001_v28  ;;  %vm1003_vm7 = vcmp.eq.s32.totalorder %v1000_v27, %v1001_v28 }
0x1886   :  { %v1004_v29 = vsel %vm1002_vm6, 1, %v1295_v16  ;;  %v1005_v30 = vsel %vm1003_vm7, 1, %v1295_v16 }
0x1887   :  { %v1006_v31 = vsel %vm54_vm5, %v1004_v29, 0  ;;  %v1007_v32 = vsel %vm54_vm5, %v1005_v30, 0 }
0x1888   :  { %v1008_v33 = vadd.s32 %v1007_v32, %v1006_v31 }
0x188a   :  { %v1010_v34 = vshrl.u32 %v1008_v33, 16  ;;  %v1009_v35 = vand.u32 65535, %v1008_v33 }
0x188c   :  { %v1012_v36 = vcvt.s32.f32 %v1010_v34  ;;  %v1011_v37 = vcvt.s32.f32 %v1009_v35 }
0x188e   :  { %1015 = vadd.xlane.f32.xlu0 %v1012_v36  ;;  %1013 = vadd.xlane.f32.xlu1 %v1011_v37 }
0x191b   :  { %v1016_v38 = vpop.xlane.xlu0 %1015  ;;  %v1014_v39 = vpop.xlane.xlu1 %1013 }
0x191c   :  { %v1018_v40 = vcvt.f32.s32 %v1016_v38  ;;  %v1017_v42 = vcvt.f32.s32 %v1014_v39 }
0x191e   :  { %v1019_v41 = vshll.u32 %v1018_v40, 16 }
0x1920   :  { %v1020_v43 = vadd.s32 %v1019_v41, %v1017_v42 }
0x1922   :  { %v1021_v44 = vrot.slane %v1020_v43, 4 }
0x1924   :  { %v1022_v45 = vadd.s32 %v1021_v44, %v1020_v43 }
0x1926   :  { %v1023_v46 = vrot.slane %v1022_v45, 2 }
0x1928   :  { %v1024_v47 = vadd.s32 %v1023_v46, %v1022_v45 }
0x192a   :  { %v1025_v48 = vrot.slane %v1024_v47, 1 }
0x192c   :  { %v1026_v49 = vadd.s32 %v1025_v48, %v1024_v47 }
0x192e   :  { %1227 = vpush %v1026_v49 }
0x195f   :  { %s1228_s20 = spop %1227 }
0x1960   :  { %p1028_p8 = scmp.ge.s32.totalorder %s1976_s18, %s1228_s20  ;;  %s1031_s21 = ssub.s32 %s1976_s18, %s1228_s20 }
0x1962   :  { %s1978_s22 = smov (!%p1028_p8, %s1029_s22), %s1974_s19  ;;  %s1980_s21 = smov (!%p1028_p8, %s1031_s21), %s1976_s18 }
0x1963   :  { %v1035_v52 = vstv %s1978_s22  ;;  %s1063_s24 = sor.u32 4, %s1978_s22 }
0x1964   :  { %vm1036_vm8 = vcmp.eq.s32.totalorder %v1033_v50, %v1035_v52  ;;  %vm1037_vm9 = vcmp.eq.s32.totalorder %v1034_v51, %v1035_v52 }
0x1965   :  { %v1038_v53 = vsel %vm1036_vm8, 1, %v1295_v16  ;;  %v1039_v54 = vsel %vm1037_vm9, 1, %v1295_v16 }
0x1966   :  { %v1040_v55 = vsel %vm54_vm5, %v1038_v53, 0  ;;  %v1041_v56 = vsel %vm54_vm5, %v1039_v54, 0 }
0x1967   :  { %v1042_v57 = vadd.s32 %v1041_v56, %v1040_v55 }
0x1969   :  { %v1044_v58 = vshrl.u32 %v1042_v57, 16  ;;  %v1043_v59 = vand.u32 65535, %v1042_v57 }
0x196b   :  { %v1046_v60 = vcvt.s32.f32 %v1044_v58  ;;  %v1045_v61 = vcvt.s32.f32 %v1043_v59 }
0x196d   :  { %1049 = vadd.xlane.f32.xlu0 %v1046_v60  ;;  %1047 = vadd.xlane.f32.xlu1 %v1045_v61  ;;  %v1242_v60 = vld [vmem:[#allocation3] sm:$0xff] }
0x19fa   :  { %v1050_v62 = vpop.xlane.xlu0 %1049  ;;  %v1048_v63 = vpop.xlane.xlu1 %1047 }
0x19fb   :  { %v1052_v0 = vcvt.f32.s32 %v1050_v62  ;;  %v1051_v2 = vcvt.f32.s32 %v1048_v63  ;;  %v1243_v62 = vld [vmem:[#allocation3 + $0x8] sm:$0xff] }
0x19fd   :  { %v1053_v1 = vshll.u32 %v1052_v0, 16 }
0x19ff   :  { %v1054_v3 = vadd.s32 %v1053_v1, %v1051_v2 }
0x1a01   :  { %v1055_v4 = vrot.slane %v1054_v3, 4 }
0x1a03   :  { %v1056_v5 = vadd.s32 %v1055_v4, %v1054_v3 }
0x1a05   :  { %v1057_v6 = vrot.slane %v1056_v5, 2 }
0x1a07   :  { %v1058_v8 = vadd.s32 %v1057_v6, %v1056_v5 }
0x1a09   :  { %v1059_v9 = vrot.slane %v1058_v8, 1 }
0x1a0b   :  { %v1060_v10 = vadd.s32 %v1059_v9, %v1058_v8 }
0x1a0d   :  { %1229 = vpush %v1060_v10 }
0x1a3e   :  { %s1230_s0 = spop %1229 }
0x1a3f   :  { %p1062_p9 = scmp.ge.s32.totalorder %s1980_s21, %s1230_s0  ;;  %s1065_s23 = ssub.s32 %s1980_s21, %s1230_s0 }
0x1a41   :  { %s1982_s24 = smov (!%p1062_p9, %s1063_s24), %s1978_s22  ;;  %s1984_s23 = smov (!%p1062_p9, %s1065_s23), %s1980_s21 }
0x1a42   :  { %v1069_v15 = vstv %s1982_s24  ;;  %s1097_s27 = sor.u32 2, %s1982_s24 }
0x1a43   :  { %vm1070_vm10 = vcmp.eq.s32.totalorder %v1067_v11, %v1069_v15  ;;  %vm1071_vm11 = vcmp.eq.s32.totalorder %v1068_v14, %v1069_v15 }
0x1a44   :  { %v1072_v17 = vsel %vm1070_vm10, 1, %v1295_v16  ;;  %v1073_v18 = vsel %vm1071_vm11, 1, %v1295_v16 }
0x1a45   :  { %v1074_v19 = vsel %vm54_vm5, %v1072_v17, 0  ;;  %v1075_v20 = vsel %vm54_vm5, %v1073_v18, 0 }
0x1a46   :  { %v1076_v21 = vadd.s32 %v1075_v20, %v1074_v19 }
0x1a48   :  { %v1078_v22 = vshrl.u32 %v1076_v21, 16  ;;  %v1077_v23 = vand.u32 65535, %v1076_v21 }
0x1a4a   :  { %v1080_v24 = vcvt.s32.f32 %v1078_v22  ;;  %v1079_v25 = vcvt.s32.f32 %v1077_v23 }
0x1a4c   :  { %1083 = vadd.xlane.f32.xlu0 %v1080_v24  ;;  %1081 = vadd.xlane.f32.xlu1 %v1079_v25 }
0x1ad9   :  { %v1084_v26 = vpop.xlane.xlu0 %1083  ;;  %v1082_v27 = vpop.xlane.xlu1 %1081 }
0x1ada   :  { %v1086_v28 = vcvt.f32.s32 %v1084_v26  ;;  %v1085_v30 = vcvt.f32.s32 %v1082_v27 }
0x1adc   :  { %v1087_v29 = vshll.u32 %v1086_v28, 16 }
0x1ade   :  { %v1088_v31 = vadd.s32 %v1087_v29, %v1085_v30 }
0x1ae0   :  { %v1089_v32 = vrot.slane %v1088_v31, 4 }
0x1ae2   :  { %v1090_v33 = vadd.s32 %v1089_v32, %v1088_v31 }
0x1ae4   :  { %v1091_v34 = vrot.slane %v1090_v33, 2 }
0x1ae6   :  { %v1092_v35 = vadd.s32 %v1091_v34, %v1090_v33 }
0x1ae8   :  { %v1093_v36 = vrot.slane %v1092_v35, 1 }
0x1aea   :  { %v1094_v37 = vadd.s32 %v1093_v36, %v1092_v35 }
0x1aec   :  { %1231 = vpush %v1094_v37 }
0x1b1d   :  { %s1232_s25 = spop %1231 }
0x1b1e   :  { %p1096_p10 = scmp.ge.s32.totalorder %s1984_s23, %s1232_s25  ;;  %s1099_s26 = ssub.s32 %s1984_s23, %s1232_s25 }
0x1b20   :  { %s1986_s27 = smov (!%p1096_p10, %s1097_s27), %s1982_s24  ;;  %s1988_s26 = smov (!%p1096_p10, %s1099_s26), %s1984_s23 }
0x1b21   :  { %v1101_v38 = vstv %s1986_s27  ;;  %s1129_s29 = sor.u32 1, %s1986_s27 }
0x1b22   :  { %vm1102_vm12 = vcmp.eq.s32.totalorder %v1330_v12, %v1101_v38  ;;  %vm1103_vm13 = vcmp.eq.s32.totalorder %v1334_v13, %v1101_v38 }
0x1b23   :  { %v1104_v39 = vsel %vm1102_vm12, 1, %v1295_v16  ;;  %v1105_v40 = vsel %vm1103_vm13, 1, %v1295_v16 }
0x1b24   :  { %v1106_v41 = vsel %vm54_vm5, %v1104_v39, 0  ;;  %v1107_v42 = vsel %vm54_vm5, %v1105_v40, 0 }
0x1b25   :  { %v1108_v43 = vadd.s32 %v1107_v42, %v1106_v41 }
0x1b27   :  { %v1110_v44 = vshrl.u32 %v1108_v43, 16  ;;  %v1109_v45 = vand.u32 65535, %v1108_v43 }
0x1b29   :  { %v1112_v46 = vcvt.s32.f32 %v1110_v44  ;;  %v1111_v47 = vcvt.s32.f32 %v1109_v45 }
0x1b2b   :  { %1115 = vadd.xlane.f32.xlu0 %v1112_v46  ;;  %1113 = vadd.xlane.f32.xlu1 %v1111_v47 }
0x1bb8   :  { %v1116_v48 = vpop.xlane.xlu0 %1115  ;;  %v1114_v49 = vpop.xlane.xlu1 %1113 }
0x1bb9   :  { %v1118_v50 = vcvt.f32.s32 %v1116_v48  ;;  %v1117_v52 = vcvt.f32.s32 %v1114_v49 }
0x1bbb   :  { %v1119_v51 = vshll.u32 %v1118_v50, 16 }
0x1bbd   :  { %v1120_v16 = vadd.s32 %v1119_v51, %v1117_v52 }
0x1bbf   :  { %v1121_v53 = vrot.slane %v1120_v16, 4 }
0x1bc1   :  { %v1122_v54 = vadd.s32 %v1121_v53, %v1120_v16 }
0x1bc3   :  { %v1123_v55 = vrot.slane %v1122_v54, 2 }
0x1bc5   :  { %v1124_v56 = vadd.s32 %v1123_v55, %v1122_v54 }
0x1bc7   :  { %v1125_v57 = vrot.slane %v1124_v56, 1 }
0x1bc9   :  { %v1126_v58 = vadd.s32 %v1125_v57, %v1124_v56 }
0x1bcb   :  { %1233 = vpush %v1126_v58 }
0x1bfc   :  { %s1234_s28 = spop %1233 }
0x1bfd   :  { %p1128_p11 = scmp.ge.s32.totalorder %s1988_s26, %s1234_s28 }
0x1bff   :  { %s1990_s29 = smov (!%p1128_p11, %s1129_s29), %s1986_s27 }
0x1c00   :  { %v1131_v59 = vstv %s1990_s29 }
0x1c01   :  { %vm1132_vm14 = vcmp.eq.s32.totalorder %v1330_v12, %v1131_v59  ;;  %vm1133_vm15 = vcmp.eq.s32.totalorder %v1334_v13, %v1131_v59 }
0x1c02   :  { %vm1134_vm0 = vmand %vm1324_vm4, %vm1132_vm14 }
0x1c03   :  { %vm1135_vm1 = vmand %vm1324_vm4, %vm1133_vm15  ;;  %v1136_v61 = vsel %vm1134_vm0, %v1242_v60, -inf  ;;  %vm1154_vm4 = vcmask 0  }
0x1c04   :  { %v1137_v63 = vsel %vm1135_vm1, %v1243_v62, -inf  ;;  %v1138_v0 = vsel %vm54_vm5, %v1136_v61, -inf }
0x1c05   :  { %v1139_v1 = vsel %vm54_vm5, %v1137_v63, -inf }
0x1c06   :  { %v1140_v2 = vmax.f32 %v1138_v0, %v1139_v1 }
0x1c08   :  { %1141 = vmax.xlane.f32.xlu0 %v1140_v2 }
0x1c95   :  { %v1142_v3 = vpop.xlane.xlu0 %1141 }
0x1c96   :  { %v1143_v12 = vrot.slane %v1142_v3, 4 }
0x1c98   :  { %v1144_v4 = vmax.f32 %v1142_v3, %v1143_v12 }
0x1c9a   :  { %v1145_v13 = vrot.slane %v1144_v4, 2 }
0x1c9c   :  { %v1146_v5 = vmax.f32 %v1144_v4, %v1145_v13 }
0x1c9e   :  { %v1147_v6 = vrot.slane %v1146_v5, 1 }
0x1ca0   :  { %v1148_v8 = vmax.f32 %v1146_v5, %v1147_v6 }
0x1ca2   :  { %1235 = vpush %v1148_v8 }
0x1cd3   :  { %s1236_s30 = spop %1235 }
0x1cd4   :  { %s1151_s7 = ssub.f32 %s1236_s30, %s1863_s1 }
0x1cd6   :  { %s1152_s8 = sand.u32 2147483647, %s1151_s7 }
0x1cd7   :  { %v1153_v7 = vstv %s1152_s8 }
0x1cd8   :  { %1155 = vst.msk [vmem:[#allocation6] sm:$0x1] %vm1154_vm4, %v1153_v7 }
0x1cd9   :  { %1277 = shalt.err (!%p1274_p2)
}
0x1cda   :  { %s1278_s13 = scalar_lea.hbm %s1864_s2, 16 }
0x1cdb   :  { %p1279_p3 = scmp.ne.s32.totalorder %s1864_s2, %s1278_s13  ;;  %p1282_p4 = scmp.lt.u32.totalorder %s1278_s13, %s1864_s2 }
0x1cdd   :  { %p1284_p5 = pnand %p1282_p4, %p1279_p3 }
0x1cdf   :  { %1287 = shalt.err (!%p1284_p5)
}
0x1ce0   :  { %1165 = dma.vmem_to_hbm [thread:$0]  %s1163_s4, 16, %s1864_s2, [#allocation5]  }
0x1ce1   :  { %1290 = dma.done.wait [#allocation5], 16  }
0x1ce2   :  { %1291 = vsyncadd [#allocation5], 4294967280 }
0x1ce3   :  { %1169 = vsyncpa [#allocation4], 1 }
0x1ce4   :  { %1170 = vsyncpa [#allocation5], 1 }

</bundles_post_ra>
